<compile_context>
chip_gen: v5e
topology: v5e:2x2
jax: 0.10.0
libtpu: 0.0.40
codegen_flags: <defaults>
</compile_context>

<pallas_src>
import functools

import jax
import jax.numpy as jnp
from jax import lax
from jax.experimental import pallas as pl
from jax.experimental.pallas import tpu as pltpu


def _round_up(n: int, m: int) -> int:
    return ((n + m - 1) // m) * m


def _mm(a, b, bf16: bool):
    """MXU matmul with f32 accumulation; optional bf16 inputs (v6e/v7x)."""
    if bf16:
        a = a.astype(jnp.bfloat16)
        b = b.astype(jnp.bfloat16)
    return jnp.dot(a, b, preferred_element_type=jnp.float32)


def _context_gru_kernel(
    # inputs
    x_ref,                       # (T*Bp, D)  seq-major, batch padded to mult of 8
    w1_ref, b1_ref,              # MLP layer 1: (D, S), (1, S)
    w2_ref, b2_ref,              # MLP layer 2: (S, D), (1, D)
    wih_ref, bi_ref,             # fused input proj, gate-major cols: (D, 6H), (1, 6H)
    whh_ref,                     # per-gate block-diag recurrent weight: (2H, 6H)
    bhn_ref,                     # n-gate hidden bias, both dirs: (1, 2H)
    wh_ref, bh_ref,              # fused heads [mu | lv]: (2H, 2C), (1, 2C)
    # outputs
    out_ref,                     # (Bp, 2C) = [mu | sd]
    # scratch
    gi_scr,                      # (T*Bp, 6H): precomputed input gates, both dirs
    *, T: int, Bp: int, H: int, C: int, bf16: bool,
):
    G = 2 * H                    # per-gate width (fwd | bwd)

    # ---- Phase 1: MLP + fused bidirectional input projection (whole seq) ----
    # One large MXU matmul chain instead of T tiny per-step matmuls; the two
    # directions share a single (D, 6H) weight -> half the weight pushes.
    x = x_ref[...]
    h1 = jnp.maximum(_mm(x, w1_ref[...], bf16) + b1_ref[...], 0.0)   # ReLU
    xm = _mm(h1, w2_ref[...], bf16) + b2_ref[...]                    # (T*Bp, D)
    gi_scr[...] = _mm(xm, wih_ref[...], bf16) + bi_ref[...]          # (T*Bp, 6H)

    # ---- Phase 2: bidirectional GRU recurrence (1 matmul / step, stacked) ---
    whh = whh_ref[...]
    if bf16:
        whh = whh.astype(jnp.bfloat16)        # hoisted loop-invariant cast
    # Hoist broadcasts / masks out of the time loop (no CSE for broadcasts).
    bhn = jnp.broadcast_to(bhn_ref[...], (Bp, G))
    col = lax.broadcasted_iota(jnp.int32, (Bp, 3 * G), 1)
    fwd_mask = (col % G) < H                  # True on fwd-direction columns

    def step(s, h_cat):
        # h_cat: (Bp, 2H) = [h_f | h_b]
        off_f = pl.multiple_of(s * Bp, 8)                 # fwd reads time s
        off_b = pl.multiple_of((T - 1 - s) * Bp, 8)       # bwd reads time T-1-s
        gi_f = gi_scr[pl.ds(off_f, Bp), :]
        gi_b = gi_scr[pl.ds(off_b, Bp), :]
        gi = jnp.where(fwd_mask, gi_f, gi_b)              # (Bp, 6H) both dirs
        a = h_cat.astype(jnp.bfloat16) if bf16 else h_cat
        gh = jnp.dot(a, whh, preferred_element_type=jnp.float32)   # (Bp, 6H)
        # PyTorch GRU cell (gi already holds W_ih x + b_ih (+ b_hh[r,z])),
        # executed once for both directions on 2H-wide tiles.
        r = jax.nn.sigmoid(gi[:, :G] + gh[:, :G])
        z = jax.nn.sigmoid(gi[:, G:2 * G] + gh[:, G:2 * G])
        n = jnp.tanh(gi[:, 2 * G:] + r * (gh[:, 2 * G:] + bhn))
        return (1.0 - z) * n + z * h_cat

    h0 = jnp.zeros((Bp, G), jnp.float32)
    h_cat = lax.fori_loop(0, T, step, h0, unroll=min(T, 8))

    # ---- Phase 3: fused context heads ----------------------------------------
    # h_cat is already [h_f | h_b]; one (2H, 2C) matmul gives [mu | lv].
    head = _mm(h_cat, wh_ref[...], bf16) + bh_ref[...]    # (Bp, 2C)
    mu = head[:, :C]
    sd = jnp.clip(jax.nn.softplus(head[:, C:]), 1e-5, 5.0)
    out_ref[...] = jnp.concatenate([mu, sd], axis=-1).astype(out_ref.dtype)


@functools.partial(jax.jit, static_argnums=(2, 3))
def context_gru_forward(x, params, temporal_hidden_size, use_bf16_matmul=False):
    """x: (T, B, D).  Returns ((mu, sd), z) with eval-mode semantics.

    use_bf16_matmul: enable bf16 MXU inputs (f32 accumulation).  Recommended
    on v6e/v7x for throughput; kept off by default to match the f32 PyTorch
    reference numerics through the length-T recurrence."""
    T, B, D = x.shape
    H = temporal_hidden_size
    G = 2 * H
    C = params["head_w"].shape[1] // 2
    S = params["mlp_w1"].shape[1]
    Bp = _round_up(B, 8)   # sublane-aligned batch (padded rows sliced off below)

    if Bp != B:
        x = jnp.pad(x, ((0, 0), (0, Bp - B), (0, 0)))
    x2d = x.reshape(T * Bp, D)

    # VMEM budget: activations + gate scratch + weights (+50% headroom).
    n_words = (T * Bp * D                     # x2d
               + T * Bp * 3 * G               # gi scratch
               + Bp * 2 * C                   # output
               + D * S + S + S * D + D        # MLP weights
               + D * 3 * G + 3 * G            # fused input projection
               + G * 3 * G + G                # block-diag recurrent weight + bias
               + G * 2 * C + 2 * C)           # fused heads
    vmem_limit = min(64 << 20, max(int(4 * n_words * 1.5) + (2 << 20), 8 << 20))

    vmem = pl.BlockSpec(memory_space=pltpu.MemorySpace.VMEM)
    kernel = functools.partial(_context_gru_kernel, T=T, Bp=Bp, H=H, C=C,
                               bf16=use_bf16_matmul)
    out = pl.pallas_call(
        kernel,
        out_shape=jax.ShapeDtypeStruct((Bp, 2 * C), jnp.float32),
        in_specs=[vmem] * 11,
        out_specs=vmem,
        scratch_shapes=[pltpu.VMEM((T * Bp, 3 * G), jnp.float32)],
        compiler_params=pltpu.CompilerParams(vmem_limit_bytes=vmem_limit),
    )(x2d,
      params["mlp_w1"], params["mlp_b1"], params["mlp_w2"], params["mlp_b2"],
      params["wih_cat"], params["bi_cat"], params["whh_blk"], params["bhn_cat"],
      params["head_w"], params["head_b"])

    mu = out[:B, :C]
    sd = out[:B, C:]
    # Eval mode: Normal(mu, sd).mean.  TODO(synk): training-mode rsample().
    z = mu
    return (mu, sd), z


def init_params(key, input_size, spatial_hidden, temporal_hidden, context_size):
    """PyTorch-style uniform init, laid out for the fused kernel:
       - all linear weights stored pre-transposed as (in, out)
       - GRU gate columns gate-major across directions: [r_f r_b|z_f z_b|n_f n_b]
       - recurrent weight stored as per-gate block-diagonal (2H, 6H) so one
         matmul serves both directions on h_cat = [h_f | h_b]
       - b_ih and the r/z slice of b_hh are pre-folded into bi_cat; only the
         n-gate hidden bias stays separate (bhn_cat), per PyTorch semantics
       - context_mu / context_lv weights concatenated into one (2H, 2C) head."""
    H = temporal_hidden

    def lin(k, fan_in, fan_out):
        bound = 1.0 / jnp.sqrt(jnp.float32(fan_in))
        kw, kb = jax.random.split(k)
        w = jax.random.uniform(kw, (fan_in, fan_out), jnp.float32, -bound, bound)
        b = jax.random.uniform(kb, (1, fan_out), jnp.float32, -bound, bound)
        return w, b

    ks = jax.random.split(key, 5)
    p = {}
    p["mlp_w1"], p["mlp_b1"] = lin(ks[0], input_size, spatial_hidden)
    p["mlp_w2"], p["mlp_b2"] = lin(ks[1], spatial_hidden, input_size)

    gbound = 1.0 / jnp.sqrt(jnp.float32(H))

    def gru_dir(k):
        kk = jax.random.split(k, 4)
        w_ih = jax.random.uniform(kk[0], (input_size, 3 * H), jnp.float32, -gbound, gbound)
        w_hh = jax.random.uniform(kk[1], (H, 3 * H), jnp.float32, -gbound, gbound)
        b_ih = jax.random.uniform(kk[2], (3 * H,), jnp.float32, -gbound, gbound)
        b_hh = jax.random.uniform(kk[3], (3 * H,), jnp.float32, -gbound, gbound)
        return w_ih, w_hh, b_ih, b_hh

    kf, kb = jax.random.split(ks[2])
    wih_f, whh_f, bih_f, bhh_f = gru_dir(kf)
    wih_b, whh_b, bih_b, bhh_b = gru_dir(kb)

    def gate_major(af, ab):
        # [r|z|n] per direction -> [r_f r_b | z_f z_b | n_f n_b] along last axis.
        blocks = []
        for g in range(3):
            blocks += [af[..., g * H:(g + 1) * H], ab[..., g * H:(g + 1) * H]]
        return jnp.concatenate(blocks, axis=-1)

    p["wih_cat"] = gate_major(wih_f, wih_b)                           # (D, 6H)
    bi_f = jnp.concatenate([bih_f[:2 * H] + bhh_f[:2 * H], bih_f[2 * H:]])
    bi_b = jnp.concatenate([bih_b[:2 * H] + bhh_b[:2 * H], bih_b[2 * H:]])
    p["bi_cat"] = gate_major(bi_f, bi_b).reshape(1, 6 * H)            # (1, 6H)

    zblk = jnp.zeros((H, H), jnp.float32)

    def blkdiag(a, b):
        return jnp.concatenate([jnp.concatenate([a, zblk], axis=1),
                                jnp.concatenate([zblk, b], axis=1)], axis=0)

    p["whh_blk"] = jnp.concatenate(
        [blkdiag(whh_f[:, g * H:(g + 1) * H], whh_b[:, g * H:(g + 1) * H])
         for g in range(3)], axis=1)                                  # (2H, 6H)
    p["bhn_cat"] = jnp.concatenate([bhh_f[2 * H:], bhh_b[2 * H:]]).reshape(1, 2 * H)

    wmu, bmu = lin(ks[3], 2 * H, context_size)
    wlv, blv = lin(ks[4], 2 * H, context_size)
    p["head_w"] = jnp.concatenate([wmu, wlv], axis=1)                 # (2H, 2C)
    p["head_b"] = jnp.concatenate([bmu, blv], axis=1)                 # (1, 2C)
    return p


if __name__ == "__main__":
    T, B = 8, 4
    input_size = 16
    spatial_hidden_size = 32
    temporal_hidden_size = 32
    context_size = 8

    key = jax.random.PRNGKey(0)
    kx, kp = jax.random.split(key)
    x = jax.random.normal(kx, (T, B, input_size), dtype=jnp.float32)
    params = init_params(kp, input_size, spatial_hidden_size,
                         temporal_hidden_size, context_size)

    (mu, sd), z = context_gru_forward(x, params, temporal_hidden_size)
    jax.block_until_ready((mu, sd, z))

    assert mu.shape == (B, context_size)
    assert sd.shape == (B, context_size)
    assert z.shape == (B, context_size)
    assert bool(jnp.all(jnp.isfinite(mu))) and bool(jnp.all(jnp.isfinite(sd)))
    assert bool(jnp.all(sd >= 1e-5)) and bool(jnp.all(sd <= 5.0))
    print("KERNEL_OK")
</pallas_src>

<mosaic_0001>
module attributes {stable_mosaic.version = 11 : i64} {
  func.func @_context_gru_kernel(%arg0: memref<64x16xf32, #tpu.memory_space<vmem>>, %arg1: memref<16x32xf32, #tpu.memory_space<vmem>>, %arg2: memref<1x32xf32, #tpu.memory_space<vmem>>, %arg3: memref<32x16xf32, #tpu.memory_space<vmem>>, %arg4: memref<1x16xf32, #tpu.memory_space<vmem>>, %arg5: memref<16x192xf32, #tpu.memory_space<vmem>>, %arg6: memref<1x192xf32, #tpu.memory_space<vmem>>, %arg7: memref<64x192xf32, #tpu.memory_space<vmem>>, %arg8: memref<1x64xf32, #tpu.memory_space<vmem>>, %arg9: memref<64x16xf32, #tpu.memory_space<vmem>>, %arg10: memref<1x16xf32, #tpu.memory_space<vmem>>, %arg11: memref<8x16xf32, #tpu.memory_space<vmem>>, %arg12: memref<64x192xf32, #tpu.memory_space<vmem>>) attributes {dimension_semantics = [], scalar_prefetch = 0 : i64, scratch_operands = 1 : i64, tpu.core_type = #tpu.core_type<tc>} {
    %c0 = arith.constant 0 : index
    %c0_0 = arith.constant 0 : index
    %0 = vector.load %arg0[%c0, %c0_0] : memref<64x16xf32, #tpu.memory_space<vmem>>, vector<64x16xf32>
    %c0_1 = arith.constant 0 : index
    %c0_2 = arith.constant 0 : index
    %1 = vector.load %arg1[%c0_1, %c0_2] : memref<16x32xf32, #tpu.memory_space<vmem>>, vector<16x32xf32>
    %cst = arith.constant dense<0.000000e+00> : vector<64x32xf32>
    %2 = tpu.matmul %0, %1, %cst {dimension_numbers = #tpu.dot_dimension_numbers<[1], [0], [0], [1], [0, 0, 1, 1], [], []>} : vector<64x16xf32>, vector<16x32xf32>, vector<64x32xf32> -> vector<64x32xf32>
    %c0_3 = arith.constant 0 : index
    %c0_4 = arith.constant 0 : index
    %3 = vector.load %arg2[%c0_3, %c0_4] : memref<1x32xf32, #tpu.memory_space<vmem>>, vector<1x32xf32>
    %4 = vector.broadcast %3 : vector<1x32xf32> to vector<64x32xf32>
    %5 = arith.addf %2, %4 : vector<64x32xf32>
    %cst_5 = arith.constant 0.000000e+00 : f32
    %6 = vector.broadcast %cst_5 : f32 to vector<64x32xf32>
    %7 = arith.maximumf %5, %6 : vector<64x32xf32>
    %c0_6 = arith.constant 0 : index
    %c0_7 = arith.constant 0 : index
    %8 = vector.load %arg3[%c0_6, %c0_7] : memref<32x16xf32, #tpu.memory_space<vmem>>, vector<32x16xf32>
    %cst_8 = arith.constant dense<0.000000e+00> : vector<64x16xf32>
    %9 = tpu.matmul %7, %8, %cst_8 {dimension_numbers = #tpu.dot_dimension_numbers<[1], [0], [0], [1], [0, 0, 1, 1], [], []>} : vector<64x32xf32>, vector<32x16xf32>, vector<64x16xf32> -> vector<64x16xf32>
    %c0_9 = arith.constant 0 : index
    %c0_10 = arith.constant 0 : index
    %10 = vector.load %arg4[%c0_9, %c0_10] : memref<1x16xf32, #tpu.memory_space<vmem>>, vector<1x16xf32>
    %11 = vector.broadcast %10 : vector<1x16xf32> to vector<64x16xf32>
    %12 = arith.addf %9, %11 : vector<64x16xf32>
    %c0_11 = arith.constant 0 : index
    %c0_12 = arith.constant 0 : index
    %13 = vector.load %arg5[%c0_11, %c0_12] : memref<16x192xf32, #tpu.memory_space<vmem>>, vector<16x192xf32>
    %cst_13 = arith.constant dense<0.000000e+00> : vector<64x192xf32>
    %14 = tpu.matmul %12, %13, %cst_13 {dimension_numbers = #tpu.dot_dimension_numbers<[1], [0], [0], [1], [0, 0, 1, 1], [], []>} : vector<64x16xf32>, vector<16x192xf32>, vector<64x192xf32> -> vector<64x192xf32>
    %c0_14 = arith.constant 0 : index
    %c0_15 = arith.constant 0 : index
    %15 = vector.load %arg6[%c0_14, %c0_15] : memref<1x192xf32, #tpu.memory_space<vmem>>, vector<1x192xf32>
    %16 = vector.broadcast %15 : vector<1x192xf32> to vector<64x192xf32>
    %17 = arith.addf %14, %16 : vector<64x192xf32>
    %c0_16 = arith.constant 0 : index
    %c0_17 = arith.constant 0 : index
    %18 = vector.load %arg12[%c0_16, %c0_17] : memref<64x192xf32, #tpu.memory_space<vmem>>, vector<64x192xf32>
    tpu.vector_store %arg12[%c0_16, %c0_17], %17 {strides = array<i32>} : memref<64x192xf32, #tpu.memory_space<vmem>>, vector<64x192xf32>,
    %c0_18 = arith.constant 0 : index
    %c0_19 = arith.constant 0 : index
    %19 = vector.load %arg7[%c0_18, %c0_19] : memref<64x192xf32, #tpu.memory_space<vmem>>, vector<64x192xf32>
    %c0_20 = arith.constant 0 : index
    %c0_21 = arith.constant 0 : index
    %20 = vector.load %arg8[%c0_20, %c0_21] : memref<1x64xf32, #tpu.memory_space<vmem>>, vector<1x64xf32>
    %21 = vector.shape_cast %20 : vector<1x64xf32> to vector<1x64xf32>
    %22 = vector.broadcast %21 : vector<1x64xf32> to vector<8x64xf32>
    %23 = tpu.iota {dimensions = array<i32: 1>} : vector<8x192xi32>
    %c64_i32 = arith.constant 64 : i32
    %c0_i32 = arith.constant 0 : i32
    %24 = arith.cmpi eq, %c64_i32, %c0_i32 : i32
    %c1_i32 = arith.constant 1 : i32
    %25 = arith.select %24, %c1_i32, %c64_i32 : i32
    %26 = vector.broadcast %25 : i32 to vector<8x192xi32>
    %27 = arith.remsi %23, %26 : vector<8x192xi32>
    %c0_i32_22 = arith.constant 0 : i32
    %28 = vector.broadcast %c0_i32_22 : i32 to vector<8x192xi32>
    %29 = arith.cmpi ne, %27, %28 : vector<8x192xi32>
    %c0_i32_23 = arith.constant 0 : i32
    %30 = vector.broadcast %c0_i32_23 : i32 to vector<8x192xi32>
    %31 = arith.cmpi slt, %27, %30 : vector<8x192xi32>
    %c0_i32_24 = arith.constant 0 : i32
    %32 = arith.cmpi slt, %25, %c0_i32_24 : i32
    %33 = vector.broadcast %32 : i1 to vector<8x192xi1>
    %34 = vector.broadcast %33 : vector<8x192xi1> to vector<8x192xi1>
    %35 = arith.xori %31, %34 : vector<8x192xi1>
    %36 = arith.andi %35, %29 : vector<8x192xi1>
    %37 = vector.broadcast %25 : i32 to vector<8x192xi32>
    %38 = arith.addi %27, %37 : vector<8x192xi32>
    %39 = arith.select %36, %38, %27 : vector<8x192xi1>, vector<8x192xi32>
    %c32_i32 = arith.constant 32 : i32
    %40 = vector.broadcast %c32_i32 : i32 to vector<8x192xi32>
    %41 = arith.cmpi slt, %39, %40 : vector<8x192xi32>
    %cst_25 = arith.constant 0.000000e+00 : f32
    %42 = vector.broadcast %cst_25 : f32 to vector<8x64xf32>
    %c0_i32_26 = arith.constant 0 : i32
    %c8_i32 = arith.constant 8 : i32
    %43 = arith.muli %c0_i32_26, %c8_i32 : i32
    %44 = tpu.assume_multiple %43, 8 : i32
    %c7_i32 = arith.constant 7 : i32
    %45 = arith.subi %c7_i32, %c0_i32_26 : i32
    %c8_i32_27 = arith.constant 8 : i32
    %46 = arith.muli %45, %c8_i32_27 : i32
    %47 = tpu.assume_multiple %46, 8 : i32
    %48 = arith.index_cast %44 : i32 to index
    %c0_28 = arith.constant 0 : index
    %49 = vector.load %arg12[%48, %c0_28] : memref<64x192xf32, #tpu.memory_space<vmem>>, vector<8x192xf32>
    %50 = arith.index_cast %47 : i32 to index
    %c0_29 = arith.constant 0 : index
    %51 = vector.load %arg12[%50, %c0_29] : memref<64x192xf32, #tpu.memory_space<vmem>>, vector<8x192xf32>
    %52 = arith.select %41, %49, %51 : vector<8x192xi1>, vector<8x192xf32>
    %cst_30 = arith.constant dense<0.000000e+00> : vector<8x192xf32>
    %53 = tpu.matmul %42, %19, %cst_30 {dimension_numbers = #tpu.dot_dimension_numbers<[1], [0], [0], [1], [0, 0, 1, 1], [], []>} : vector<8x64xf32>, vector<64x192xf32>, vector<8x192xf32> -> vector<8x192xf32>
    %54 = vector.extract_strided_slice %52 {offsets = [0, 0], sizes = [8, 64], strides = [1, 1]} : vector<8x192xf32> to vector<8x64xf32>
    %55 = vector.extract_strided_slice %53 {offsets = [0, 0], sizes = [8, 64], strides = [1, 1]} : vector<8x192xf32> to vector<8x64xf32>
    %56 = arith.addf %54, %55 : vector<8x64xf32>
    %57 = arith.negf %56 : vector<8x64xf32>
    %58 = math.exp %57 : vector<8x64xf32>
    %cst_31 = arith.constant 1.000000e+00 : f32
    %59 = vector.broadcast %cst_31 : f32 to vector<8x64xf32>
    %60 = arith.addf %59, %58 : vector<8x64xf32>
    %61 = arith.divf %59, %60 : vector<8x64xf32>
    %62 = vector.extract_strided_slice %52 {offsets = [0, 64], sizes = [8, 64], strides = [1, 1]} : vector<8x192xf32> to vector<8x64xf32>
    %63 = vector.extract_strided_slice %53 {offsets = [0, 64], sizes = [8, 64], strides = [1, 1]} : vector<8x192xf32> to vector<8x64xf32>
    %64 = arith.addf %62, %63 : vector<8x64xf32>
    %65 = arith.negf %64 : vector<8x64xf32>
    %66 = math.exp %65 : vector<8x64xf32>
    %cst_32 = arith.constant 1.000000e+00 : f32
    %67 = vector.broadcast %cst_32 : f32 to vector<8x64xf32>
    %68 = arith.addf %67, %66 : vector<8x64xf32>
    %69 = arith.divf %67, %68 : vector<8x64xf32>
    %70 = vector.extract_strided_slice %52 {offsets = [0, 128], sizes = [8, 64], strides = [1, 1]} : vector<8x192xf32> to vector<8x64xf32>
    %71 = vector.extract_strided_slice %53 {offsets = [0, 128], sizes = [8, 64], strides = [1, 1]} : vector<8x192xf32> to vector<8x64xf32>
    %72 = arith.addf %71, %22 : vector<8x64xf32>
    %73 = arith.mulf %61, %72 : vector<8x64xf32>
    %74 = arith.addf %70, %73 : vector<8x64xf32>
    %75 = math.tanh %74 : vector<8x64xf32>
    %cst_33 = arith.constant 1.000000e+00 : f32
    %76 = vector.broadcast %cst_33 : f32 to vector<8x64xf32>
    %77 = arith.subf %76, %69 : vector<8x64xf32>
    %78 = arith.mulf %77, %75 : vector<8x64xf32>
    %79 = arith.mulf %69, %42 : vector<8x64xf32>
    %80 = arith.addf %78, %79 : vector<8x64xf32>
    %c1_i32_34 = arith.constant 1 : i32
    %c8_i32_35 = arith.constant 8 : i32
    %81 = arith.muli %c1_i32_34, %c8_i32_35 : i32
    %82 = tpu.assume_multiple %81, 8 : i32
    %c7_i32_36 = arith.constant 7 : i32
    %83 = arith.subi %c7_i32_36, %c1_i32_34 : i32
    %c8_i32_37 = arith.constant 8 : i32
    %84 = arith.muli %83, %c8_i32_37 : i32
    %85 = tpu.assume_multiple %84, 8 : i32
    %86 = arith.index_cast %82 : i32 to index
    %c0_38 = arith.constant 0 : index
    %87 = vector.load %arg12[%86, %c0_38] : memref<64x192xf32, #tpu.memory_space<vmem>>, vector<8x192xf32>
    %88 = arith.index_cast %85 : i32 to index
    %c0_39 = arith.constant 0 : index
    %89 = vector.load %arg12[%88, %c0_39] : memref<64x192xf32, #tpu.memory_space<vmem>>, vector<8x192xf32>
    %90 = arith.select %41, %87, %89 : vector<8x192xi1>, vector<8x192xf32>
    %cst_40 = arith.constant dense<0.000000e+00> : vector<8x192xf32>
    %91 = tpu.matmul %80, %19, %cst_40 {dimension_numbers = #tpu.dot_dimension_numbers<[1], [0], [0], [1], [0, 0, 1, 1], [], []>} : vector<8x64xf32>, vector<64x192xf32>, vector<8x192xf32> -> vector<8x192xf32>
    %92 = vector.extract_strided_slice %90 {offsets = [0, 0], sizes = [8, 64], strides = [1, 1]} : vector<8x192xf32> to vector<8x64xf32>
    %93 = vector.extract_strided_slice %91 {offsets = [0, 0], sizes = [8, 64], strides = [1, 1]} : vector<8x192xf32> to vector<8x64xf32>
    %94 = arith.addf %92, %93 : vector<8x64xf32>
    %95 = arith.negf %94 : vector<8x64xf32>
    %96 = math.exp %95 : vector<8x64xf32>
    %cst_41 = arith.constant 1.000000e+00 : f32
    %97 = vector.broadcast %cst_41 : f32 to vector<8x64xf32>
    %98 = arith.addf %97, %96 : vector<8x64xf32>
    %99 = arith.divf %97, %98 : vector<8x64xf32>
    %100 = vector.extract_strided_slice %90 {offsets = [0, 64], sizes = [8, 64], strides = [1, 1]} : vector<8x192xf32> to vector<8x64xf32>
    %101 = vector.extract_strided_slice %91 {offsets = [0, 64], sizes = [8, 64], strides = [1, 1]} : vector<8x192xf32> to vector<8x64xf32>
    %102 = arith.addf %100, %101 : vector<8x64xf32>
    %103 = arith.negf %102 : vector<8x64xf32>
    %104 = math.exp %103 : vector<8x64xf32>
    %cst_42 = arith.constant 1.000000e+00 : f32
    %105 = vector.broadcast %cst_42 : f32 to vector<8x64xf32>
    %106 = arith.addf %105, %104 : vector<8x64xf32>
    %107 = arith.divf %105, %106 : vector<8x64xf32>
    %108 = vector.extract_strided_slice %90 {offsets = [0, 128], sizes = [8, 64], strides = [1, 1]} : vector<8x192xf32> to vector<8x64xf32>
    %109 = vector.extract_strided_slice %91 {offsets = [0, 128], sizes = [8, 64], strides = [1, 1]} : vector<8x192xf32> to vector<8x64xf32>
    %110 = arith.addf %109, %22 : vector<8x64xf32>
    %111 = arith.mulf %99, %110 : vector<8x64xf32>
    %112 = arith.addf %108, %111 : vector<8x64xf32>
    %113 = math.tanh %112 : vector<8x64xf32>
    %cst_43 = arith.constant 1.000000e+00 : f32
    %114 = vector.broadcast %cst_43 : f32 to vector<8x64xf32>
    %115 = arith.subf %114, %107 : vector<8x64xf32>
    %116 = arith.mulf %115, %113 : vector<8x64xf32>
    %117 = arith.mulf %107, %80 : vector<8x64xf32>
    %118 = arith.addf %116, %117 : vector<8x64xf32>
    %c2_i32 = arith.constant 2 : i32
    %c8_i32_44 = arith.constant 8 : i32
    %119 = arith.muli %c2_i32, %c8_i32_44 : i32
    %120 = tpu.assume_multiple %119, 8 : i32
    %c7_i32_45 = arith.constant 7 : i32
    %121 = arith.subi %c7_i32_45, %c2_i32 : i32
    %c8_i32_46 = arith.constant 8 : i32
    %122 = arith.muli %121, %c8_i32_46 : i32
    %123 = tpu.assume_multiple %122, 8 : i32
    %124 = arith.index_cast %120 : i32 to index
    %c0_47 = arith.constant 0 : index
    %125 = vector.load %arg12[%124, %c0_47] : memref<64x192xf32, #tpu.memory_space<vmem>>, vector<8x192xf32>
    %126 = arith.index_cast %123 : i32 to index
    %c0_48 = arith.constant 0 : index
    %127 = vector.load %arg12[%126, %c0_48] : memref<64x192xf32, #tpu.memory_space<vmem>>, vector<8x192xf32>
    %128 = arith.select %41, %125, %127 : vector<8x192xi1>, vector<8x192xf32>
    %cst_49 = arith.constant dense<0.000000e+00> : vector<8x192xf32>
    %129 = tpu.matmul %118, %19, %cst_49 {dimension_numbers = #tpu.dot_dimension_numbers<[1], [0], [0], [1], [0, 0, 1, 1], [], []>} : vector<8x64xf32>, vector<64x192xf32>, vector<8x192xf32> -> vector<8x192xf32>
    %130 = vector.extract_strided_slice %128 {offsets = [0, 0], sizes = [8, 64], strides = [1, 1]} : vector<8x192xf32> to vector<8x64xf32>
    %131 = vector.extract_strided_slice %129 {offsets = [0, 0], sizes = [8, 64], strides = [1, 1]} : vector<8x192xf32> to vector<8x64xf32>
    %132 = arith.addf %130, %131 : vector<8x64xf32>
    %133 = arith.negf %132 : vector<8x64xf32>
    %134 = math.exp %133 : vector<8x64xf32>
    %cst_50 = arith.constant 1.000000e+00 : f32
    %135 = vector.broadcast %cst_50 : f32 to vector<8x64xf32>
    %136 = arith.addf %135, %134 : vector<8x64xf32>
    %137 = arith.divf %135, %136 : vector<8x64xf32>
    %138 = vector.extract_strided_slice %128 {offsets = [0, 64], sizes = [8, 64], strides = [1, 1]} : vector<8x192xf32> to vector<8x64xf32>
    %139 = vector.extract_strided_slice %129 {offsets = [0, 64], sizes = [8, 64], strides = [1, 1]} : vector<8x192xf32> to vector<8x64xf32>
    %140 = arith.addf %138, %139 : vector<8x64xf32>
    %141 = arith.negf %140 : vector<8x64xf32>
    %142 = math.exp %141 : vector<8x64xf32>
    %cst_51 = arith.constant 1.000000e+00 : f32
    %143 = vector.broadcast %cst_51 : f32 to vector<8x64xf32>
    %144 = arith.addf %143, %142 : vector<8x64xf32>
    %145 = arith.divf %143, %144 : vector<8x64xf32>
    %146 = vector.extract_strided_slice %128 {offsets = [0, 128], sizes = [8, 64], strides = [1, 1]} : vector<8x192xf32> to vector<8x64xf32>
    %147 = vector.extract_strided_slice %129 {offsets = [0, 128], sizes = [8, 64], strides = [1, 1]} : vector<8x192xf32> to vector<8x64xf32>
    %148 = arith.addf %147, %22 : vector<8x64xf32>
    %149 = arith.mulf %137, %148 : vector<8x64xf32>
    %150 = arith.addf %146, %149 : vector<8x64xf32>
    %151 = math.tanh %150 : vector<8x64xf32>
    %cst_52 = arith.constant 1.000000e+00 : f32
    %152 = vector.broadcast %cst_52 : f32 to vector<8x64xf32>
    %153 = arith.subf %152, %145 : vector<8x64xf32>
    %154 = arith.mulf %153, %151 : vector<8x64xf32>
    %155 = arith.mulf %145, %118 : vector<8x64xf32>
    %156 = arith.addf %154, %155 : vector<8x64xf32>
    %c3_i32 = arith.constant 3 : i32
    %c8_i32_53 = arith.constant 8 : i32
    %157 = arith.muli %c3_i32, %c8_i32_53 : i32
    %158 = tpu.assume_multiple %157, 8 : i32
    %c7_i32_54 = arith.constant 7 : i32
    %159 = arith.subi %c7_i32_54, %c3_i32 : i32
    %c8_i32_55 = arith.constant 8 : i32
    %160 = arith.muli %159, %c8_i32_55 : i32
    %161 = tpu.assume_multiple %160, 8 : i32
    %162 = arith.index_cast %158 : i32 to index
    %c0_56 = arith.constant 0 : index
    %163 = vector.load %arg12[%162, %c0_56] : memref<64x192xf32, #tpu.memory_space<vmem>>, vector<8x192xf32>
    %164 = arith.index_cast %161 : i32 to index
    %c0_57 = arith.constant 0 : index
    %165 = vector.load %arg12[%164, %c0_57] : memref<64x192xf32, #tpu.memory_space<vmem>>, vector<8x192xf32>
    %166 = arith.select %41, %163, %165 : vector<8x192xi1>, vector<8x192xf32>
    %cst_58 = arith.constant dense<0.000000e+00> : vector<8x192xf32>
    %167 = tpu.matmul %156, %19, %cst_58 {dimension_numbers = #tpu.dot_dimension_numbers<[1], [0], [0], [1], [0, 0, 1, 1], [], []>} : vector<8x64xf32>, vector<64x192xf32>, vector<8x192xf32> -> vector<8x192xf32>
    %168 = vector.extract_strided_slice %166 {offsets = [0, 0], sizes = [8, 64], strides = [1, 1]} : vector<8x192xf32> to vector<8x64xf32>
    %169 = vector.extract_strided_slice %167 {offsets = [0, 0], sizes = [8, 64], strides = [1, 1]} : vector<8x192xf32> to vector<8x64xf32>
    %170 = arith.addf %168, %169 : vector<8x64xf32>
    %171 = arith.negf %170 : vector<8x64xf32>
    %172 = math.exp %171 : vector<8x64xf32>
    %cst_59 = arith.constant 1.000000e+00 : f32
    %173 = vector.broadcast %cst_59 : f32 to vector<8x64xf32>
    %174 = arith.addf %173, %172 : vector<8x64xf32>
    %175 = arith.divf %173, %174 : vector<8x64xf32>
    %176 = vector.extract_strided_slice %166 {offsets = [0, 64], sizes = [8, 64], strides = [1, 1]} : vector<8x192xf32> to vector<8x64xf32>
    %177 = vector.extract_strided_slice %167 {offsets = [0, 64], sizes = [8, 64], strides = [1, 1]} : vector<8x192xf32> to vector<8x64xf32>
    %178 = arith.addf %176, %177 : vector<8x64xf32>
    %179 = arith.negf %178 : vector<8x64xf32>
    %180 = math.exp %179 : vector<8x64xf32>
    %cst_60 = arith.constant 1.000000e+00 : f32
    %181 = vector.broadcast %cst_60 : f32 to vector<8x64xf32>
    %182 = arith.addf %181, %180 : vector<8x64xf32>
    %183 = arith.divf %181, %182 : vector<8x64xf32>
    %184 = vector.extract_strided_slice %166 {offsets = [0, 128], sizes = [8, 64], strides = [1, 1]} : vector<8x192xf32> to vector<8x64xf32>
    %185 = vector.extract_strided_slice %167 {offsets = [0, 128], sizes = [8, 64], strides = [1, 1]} : vector<8x192xf32> to vector<8x64xf32>
    %186 = arith.addf %185, %22 : vector<8x64xf32>
    %187 = arith.mulf %175, %186 : vector<8x64xf32>
    %188 = arith.addf %184, %187 : vector<8x64xf32>
    %189 = math.tanh %188 : vector<8x64xf32>
    %cst_61 = arith.constant 1.000000e+00 : f32
    %190 = vector.broadcast %cst_61 : f32 to vector<8x64xf32>
    %191 = arith.subf %190, %183 : vector<8x64xf32>
    %192 = arith.mulf %191, %189 : vector<8x64xf32>
    %193 = arith.mulf %183, %156 : vector<8x64xf32>
    %194 = arith.addf %192, %193 : vector<8x64xf32>
    %c4_i32 = arith.constant 4 : i32
    %c8_i32_62 = arith.constant 8 : i32
    %195 = arith.muli %c4_i32, %c8_i32_62 : i32
    %196 = tpu.assume_multiple %195, 8 : i32
    %c7_i32_63 = arith.constant 7 : i32
    %197 = arith.subi %c7_i32_63, %c4_i32 : i32
    %c8_i32_64 = arith.constant 8 : i32
    %198 = arith.muli %197, %c8_i32_64 : i32
    %199 = tpu.assume_multiple %198, 8 : i32
    %200 = arith.index_cast %196 : i32 to index
    %c0_65 = arith.constant 0 : index
    %201 = vector.load %arg12[%200, %c0_65] : memref<64x192xf32, #tpu.memory_space<vmem>>, vector<8x192xf32>
    %202 = arith.index_cast %199 : i32 to index
    %c0_66 = arith.constant 0 : index
    %203 = vector.load %arg12[%202, %c0_66] : memref<64x192xf32, #tpu.memory_space<vmem>>, vector<8x192xf32>
    %204 = arith.select %41, %201, %203 : vector<8x192xi1>, vector<8x192xf32>
    %cst_67 = arith.constant dense<0.000000e+00> : vector<8x192xf32>
    %205 = tpu.matmul %194, %19, %cst_67 {dimension_numbers = #tpu.dot_dimension_numbers<[1], [0], [0], [1], [0, 0, 1, 1], [], []>} : vector<8x64xf32>, vector<64x192xf32>, vector<8x192xf32> -> vector<8x192xf32>
    %206 = vector.extract_strided_slice %204 {offsets = [0, 0], sizes = [8, 64], strides = [1, 1]} : vector<8x192xf32> to vector<8x64xf32>
    %207 = vector.extract_strided_slice %205 {offsets = [0, 0], sizes = [8, 64], strides = [1, 1]} : vector<8x192xf32> to vector<8x64xf32>
    %208 = arith.addf %206, %207 : vector<8x64xf32>
    %209 = arith.negf %208 : vector<8x64xf32>
    %210 = math.exp %209 : vector<8x64xf32>
    %cst_68 = arith.constant 1.000000e+00 : f32
    %211 = vector.broadcast %cst_68 : f32 to vector<8x64xf32>
    %212 = arith.addf %211, %210 : vector<8x64xf32>
    %213 = arith.divf %211, %212 : vector<8x64xf32>
    %214 = vector.extract_strided_slice %204 {offsets = [0, 64], sizes = [8, 64], strides = [1, 1]} : vector<8x192xf32> to vector<8x64xf32>
    %215 = vector.extract_strided_slice %205 {offsets = [0, 64], sizes = [8, 64], strides = [1, 1]} : vector<8x192xf32> to vector<8x64xf32>
    %216 = arith.addf %214, %215 : vector<8x64xf32>
    %217 = arith.negf %216 : vector<8x64xf32>
    %218 = math.exp %217 : vector<8x64xf32>
    %cst_69 = arith.constant 1.000000e+00 : f32
    %219 = vector.broadcast %cst_69 : f32 to vector<8x64xf32>
    %220 = arith.addf %219, %218 : vector<8x64xf32>
    %221 = arith.divf %219, %220 : vector<8x64xf32>
    %222 = vector.extract_strided_slice %204 {offsets = [0, 128], sizes = [8, 64], strides = [1, 1]} : vector<8x192xf32> to vector<8x64xf32>
    %223 = vector.extract_strided_slice %205 {offsets = [0, 128], sizes = [8, 64], strides = [1, 1]} : vector<8x192xf32> to vector<8x64xf32>
    %224 = arith.addf %223, %22 : vector<8x64xf32>
    %225 = arith.mulf %213, %224 : vector<8x64xf32>
    %226 = arith.addf %222, %225 : vector<8x64xf32>
    %227 = math.tanh %226 : vector<8x64xf32>
    %cst_70 = arith.constant 1.000000e+00 : f32
    %228 = vector.broadcast %cst_70 : f32 to vector<8x64xf32>
    %229 = arith.subf %228, %221 : vector<8x64xf32>
    %230 = arith.mulf %229, %227 : vector<8x64xf32>
    %231 = arith.mulf %221, %194 : vector<8x64xf32>
    %232 = arith.addf %230, %231 : vector<8x64xf32>
    %c5_i32 = arith.constant 5 : i32
    %c8_i32_71 = arith.constant 8 : i32
    %233 = arith.muli %c5_i32, %c8_i32_71 : i32
    %234 = tpu.assume_multiple %233, 8 : i32
    %c7_i32_72 = arith.constant 7 : i32
    %235 = arith.subi %c7_i32_72, %c5_i32 : i32
    %c8_i32_73 = arith.constant 8 : i32
    %236 = arith.muli %235, %c8_i32_73 : i32
    %237 = tpu.assume_multiple %236, 8 : i32
    %238 = arith.index_cast %234 : i32 to index
    %c0_74 = arith.constant 0 : index
    %239 = vector.load %arg12[%238, %c0_74] : memref<64x192xf32, #tpu.memory_space<vmem>>, vector<8x192xf32>
    %240 = arith.index_cast %237 : i32 to index
    %c0_75 = arith.constant 0 : index
    %241 = vector.load %arg12[%240, %c0_75] : memref<64x192xf32, #tpu.memory_space<vmem>>, vector<8x192xf32>
    %242 = arith.select %41, %239, %241 : vector<8x192xi1>, vector<8x192xf32>
    %cst_76 = arith.constant dense<0.000000e+00> : vector<8x192xf32>
    %243 = tpu.matmul %232, %19, %cst_76 {dimension_numbers = #tpu.dot_dimension_numbers<[1], [0], [0], [1], [0, 0, 1, 1], [], []>} : vector<8x64xf32>, vector<64x192xf32>, vector<8x192xf32> -> vector<8x192xf32>
    %244 = vector.extract_strided_slice %242 {offsets = [0, 0], sizes = [8, 64], strides = [1, 1]} : vector<8x192xf32> to vector<8x64xf32>
    %245 = vector.extract_strided_slice %243 {offsets = [0, 0], sizes = [8, 64], strides = [1, 1]} : vector<8x192xf32> to vector<8x64xf32>
    %246 = arith.addf %244, %245 : vector<8x64xf32>
    %247 = arith.negf %246 : vector<8x64xf32>
    %248 = math.exp %247 : vector<8x64xf32>
    %cst_77 = arith.constant 1.000000e+00 : f32
    %249 = vector.broadcast %cst_77 : f32 to vector<8x64xf32>
    %250 = arith.addf %249, %248 : vector<8x64xf32>
    %251 = arith.divf %249, %250 : vector<8x64xf32>
    %252 = vector.extract_strided_slice %242 {offsets = [0, 64], sizes = [8, 64], strides = [1, 1]} : vector<8x192xf32> to vector<8x64xf32>
    %253 = vector.extract_strided_slice %243 {offsets = [0, 64], sizes = [8, 64], strides = [1, 1]} : vector<8x192xf32> to vector<8x64xf32>
    %254 = arith.addf %252, %253 : vector<8x64xf32>
    %255 = arith.negf %254 : vector<8x64xf32>
    %256 = math.exp %255 : vector<8x64xf32>
    %cst_78 = arith.constant 1.000000e+00 : f32
    %257 = vector.broadcast %cst_78 : f32 to vector<8x64xf32>
    %258 = arith.addf %257, %256 : vector<8x64xf32>
    %259 = arith.divf %257, %258 : vector<8x64xf32>
    %260 = vector.extract_strided_slice %242 {offsets = [0, 128], sizes = [8, 64], strides = [1, 1]} : vector<8x192xf32> to vector<8x64xf32>
    %261 = vector.extract_strided_slice %243 {offsets = [0, 128], sizes = [8, 64], strides = [1, 1]} : vector<8x192xf32> to vector<8x64xf32>
    %262 = arith.addf %261, %22 : vector<8x64xf32>
    %263 = arith.mulf %251, %262 : vector<8x64xf32>
    %264 = arith.addf %260, %263 : vector<8x64xf32>
    %265 = math.tanh %264 : vector<8x64xf32>
    %cst_79 = arith.constant 1.000000e+00 : f32
    %266 = vector.broadcast %cst_79 : f32 to vector<8x64xf32>
    %267 = arith.subf %266, %259 : vector<8x64xf32>
    %268 = arith.mulf %267, %265 : vector<8x64xf32>
    %269 = arith.mulf %259, %232 : vector<8x64xf32>
    %270 = arith.addf %268, %269 : vector<8x64xf32>
    %c6_i32 = arith.constant 6 : i32
    %c8_i32_80 = arith.constant 8 : i32
    %271 = arith.muli %c6_i32, %c8_i32_80 : i32
    %272 = tpu.assume_multiple %271, 8 : i32
    %c7_i32_81 = arith.constant 7 : i32
    %273 = arith.subi %c7_i32_81, %c6_i32 : i32
    %c8_i32_82 = arith.constant 8 : i32
    %274 = arith.muli %273, %c8_i32_82 : i32
    %275 = tpu.assume_multiple %274, 8 : i32
    %276 = arith.index_cast %272 : i32 to index
    %c0_83 = arith.constant 0 : index
    %277 = vector.load %arg12[%276, %c0_83] : memref<64x192xf32, #tpu.memory_space<vmem>>, vector<8x192xf32>
    %278 = arith.index_cast %275 : i32 to index
    %c0_84 = arith.constant 0 : index
    %279 = vector.load %arg12[%278, %c0_84] : memref<64x192xf32, #tpu.memory_space<vmem>>, vector<8x192xf32>
    %280 = arith.select %41, %277, %279 : vector<8x192xi1>, vector<8x192xf32>
    %cst_85 = arith.constant dense<0.000000e+00> : vector<8x192xf32>
    %281 = tpu.matmul %270, %19, %cst_85 {dimension_numbers = #tpu.dot_dimension_numbers<[1], [0], [0], [1], [0, 0, 1, 1], [], []>} : vector<8x64xf32>, vector<64x192xf32>, vector<8x192xf32> -> vector<8x192xf32>
    %282 = vector.extract_strided_slice %280 {offsets = [0, 0], sizes = [8, 64], strides = [1, 1]} : vector<8x192xf32> to vector<8x64xf32>
    %283 = vector.extract_strided_slice %281 {offsets = [0, 0], sizes = [8, 64], strides = [1, 1]} : vector<8x192xf32> to vector<8x64xf32>
    %284 = arith.addf %282, %283 : vector<8x64xf32>
    %285 = arith.negf %284 : vector<8x64xf32>
    %286 = math.exp %285 : vector<8x64xf32>
    %cst_86 = arith.constant 1.000000e+00 : f32
    %287 = vector.broadcast %cst_86 : f32 to vector<8x64xf32>
    %288 = arith.addf %287, %286 : vector<8x64xf32>
    %289 = arith.divf %287, %288 : vector<8x64xf32>
    %290 = vector.extract_strided_slice %280 {offsets = [0, 64], sizes = [8, 64], strides = [1, 1]} : vector<8x192xf32> to vector<8x64xf32>
    %291 = vector.extract_strided_slice %281 {offsets = [0, 64], sizes = [8, 64], strides = [1, 1]} : vector<8x192xf32> to vector<8x64xf32>
    %292 = arith.addf %290, %291 : vector<8x64xf32>
    %293 = arith.negf %292 : vector<8x64xf32>
    %294 = math.exp %293 : vector<8x64xf32>
    %cst_87 = arith.constant 1.000000e+00 : f32
    %295 = vector.broadcast %cst_87 : f32 to vector<8x64xf32>
    %296 = arith.addf %295, %294 : vector<8x64xf32>
    %297 = arith.divf %295, %296 : vector<8x64xf32>
    %298 = vector.extract_strided_slice %280 {offsets = [0, 128], sizes = [8, 64], strides = [1, 1]} : vector<8x192xf32> to vector<8x64xf32>
    %299 = vector.extract_strided_slice %281 {offsets = [0, 128], sizes = [8, 64], strides = [1, 1]} : vector<8x192xf32> to vector<8x64xf32>
    %300 = arith.addf %299, %22 : vector<8x64xf32>
    %301 = arith.mulf %289, %300 : vector<8x64xf32>
    %302 = arith.addf %298, %301 : vector<8x64xf32>
    %303 = math.tanh %302 : vector<8x64xf32>
    %cst_88 = arith.constant 1.000000e+00 : f32
    %304 = vector.broadcast %cst_88 : f32 to vector<8x64xf32>
    %305 = arith.subf %304, %297 : vector<8x64xf32>
    %306 = arith.mulf %305, %303 : vector<8x64xf32>
    %307 = arith.mulf %297, %270 : vector<8x64xf32>
    %308 = arith.addf %306, %307 : vector<8x64xf32>
    %c7_i32_89 = arith.constant 7 : i32
    %c8_i32_90 = arith.constant 8 : i32
    %309 = arith.muli %c7_i32_89, %c8_i32_90 : i32
    %310 = tpu.assume_multiple %309, 8 : i32
    %c7_i32_91 = arith.constant 7 : i32
    %311 = arith.subi %c7_i32_91, %c7_i32_89 : i32
    %c8_i32_92 = arith.constant 8 : i32
    %312 = arith.muli %311, %c8_i32_92 : i32
    %313 = tpu.assume_multiple %312, 8 : i32
    %314 = arith.index_cast %310 : i32 to index
    %c0_93 = arith.constant 0 : index
    %315 = vector.load %arg12[%314, %c0_93] : memref<64x192xf32, #tpu.memory_space<vmem>>, vector<8x192xf32>
    %316 = arith.index_cast %313 : i32 to index
    %c0_94 = arith.constant 0 : index
    %317 = vector.load %arg12[%316, %c0_94] : memref<64x192xf32, #tpu.memory_space<vmem>>, vector<8x192xf32>
    %318 = arith.select %41, %315, %317 : vector<8x192xi1>, vector<8x192xf32>
    %cst_95 = arith.constant dense<0.000000e+00> : vector<8x192xf32>
    %319 = tpu.matmul %308, %19, %cst_95 {dimension_numbers = #tpu.dot_dimension_numbers<[1], [0], [0], [1], [0, 0, 1, 1], [], []>} : vector<8x64xf32>, vector<64x192xf32>, vector<8x192xf32> -> vector<8x192xf32>
    %320 = vector.extract_strided_slice %318 {offsets = [0, 0], sizes = [8, 64], strides = [1, 1]} : vector<8x192xf32> to vector<8x64xf32>
    %321 = vector.extract_strided_slice %319 {offsets = [0, 0], sizes = [8, 64], strides = [1, 1]} : vector<8x192xf32> to vector<8x64xf32>
    %322 = arith.addf %320, %321 : vector<8x64xf32>
    %323 = arith.negf %322 : vector<8x64xf32>
    %324 = math.exp %323 : vector<8x64xf32>
    %cst_96 = arith.constant 1.000000e+00 : f32
    %325 = vector.broadcast %cst_96 : f32 to vector<8x64xf32>
    %326 = arith.addf %325, %324 : vector<8x64xf32>
    %327 = arith.divf %325, %326 : vector<8x64xf32>
    %328 = vector.extract_strided_slice %318 {offsets = [0, 64], sizes = [8, 64], strides = [1, 1]} : vector<8x192xf32> to vector<8x64xf32>
    %329 = vector.extract_strided_slice %319 {offsets = [0, 64], sizes = [8, 64], strides = [1, 1]} : vector<8x192xf32> to vector<8x64xf32>
    %330 = arith.addf %328, %329 : vector<8x64xf32>
    %331 = arith.negf %330 : vector<8x64xf32>
    %332 = math.exp %331 : vector<8x64xf32>
    %cst_97 = arith.constant 1.000000e+00 : f32
    %333 = vector.broadcast %cst_97 : f32 to vector<8x64xf32>
    %334 = arith.addf %333, %332 : vector<8x64xf32>
    %335 = arith.divf %333, %334 : vector<8x64xf32>
    %336 = vector.extract_strided_slice %318 {offsets = [0, 128], sizes = [8, 64], strides = [1, 1]} : vector<8x192xf32> to vector<8x64xf32>
    %337 = vector.extract_strided_slice %319 {offsets = [0, 128], sizes = [8, 64], strides = [1, 1]} : vector<8x192xf32> to vector<8x64xf32>
    %338 = arith.addf %337, %22 : vector<8x64xf32>
    %339 = arith.mulf %327, %338 : vector<8x64xf32>
    %340 = arith.addf %336, %339 : vector<8x64xf32>
    %341 = math.tanh %340 : vector<8x64xf32>
    %cst_98 = arith.constant 1.000000e+00 : f32
    %342 = vector.broadcast %cst_98 : f32 to vector<8x64xf32>
    %343 = arith.subf %342, %335 : vector<8x64xf32>
    %344 = arith.mulf %343, %341 : vector<8x64xf32>
    %345 = arith.mulf %335, %308 : vector<8x64xf32>
    %346 = arith.addf %344, %345 : vector<8x64xf32>
    %c8_i32_99 = arith.constant 8 : i32
    %c0_100 = arith.constant 0 : index
    %c0_101 = arith.constant 0 : index
    %347 = vector.load %arg9[%c0_100, %c0_101] : memref<64x16xf32, #tpu.memory_space<vmem>>, vector<64x16xf32>
    %cst_102 = arith.constant dense<0.000000e+00> : vector<8x16xf32>
    %348 = tpu.matmul %346, %347, %cst_102 {dimension_numbers = #tpu.dot_dimension_numbers<[1], [0], [0], [1], [0, 0, 1, 1], [], []>} : vector<8x64xf32>, vector<64x16xf32>, vector<8x16xf32> -> vector<8x16xf32>
    %c0_103 = arith.constant 0 : index
    %c0_104 = arith.constant 0 : index
    %349 = vector.load %arg10[%c0_103, %c0_104] : memref<1x16xf32, #tpu.memory_space<vmem>>, vector<1x16xf32>
    %350 = vector.broadcast %349 : vector<1x16xf32> to vector<8x16xf32>
    %351 = arith.addf %348, %350 : vector<8x16xf32>
    %352 = vector.extract_strided_slice %351 {offsets = [0, 0], sizes = [8, 8], strides = [1, 1]} : vector<8x16xf32> to vector<8x8xf32>
    %353 = vector.extract_strided_slice %351 {offsets = [0, 8], sizes = [8, 8], strides = [1, 1]} : vector<8x16xf32> to vector<8x8xf32>
    %cst_105 = arith.constant 0.000000e+00 : f32
    %354 = vector.broadcast %cst_105 : f32 to vector<8x8xf32>
    %355 = arith.maximumf %353, %354 : vector<8x8xf32>
    %356 = vector.broadcast %cst_105 : f32 to vector<8x8xf32>
    %357 = arith.subf %353, %356 : vector<8x8xf32>
    %358 = arith.cmpf one, %357, %357 : vector<8x8xf32>
    %359 = vector.broadcast %cst_105 : f32 to vector<8x8xf32>
    %360 = arith.addf %353, %359 : vector<8x8xf32>
    %361 = math.absf %357 : vector<8x8xf32>
    %cst_106 = arith.constant 0.000000e+00 : f32
    %362 = vector.broadcast %cst_106 : f32 to vector<8x8xf32>
    %363 = arith.subf %362, %361 : vector<8x8xf32>
    %364 = math.exp %363 : vector<8x8xf32>
    %365 = math.log1p %364 : vector<8x8xf32>
    %366 = arith.addf %355, %365 : vector<8x8xf32>
    %367 = arith.select %358, %360, %366 : vector<8x8xi1>, vector<8x8xf32>
    %cst_107 = arith.constant 9.99999974E-6 : f32
    %cst_108 = arith.constant 5.000000e+00 : f32
    %368 = vector.broadcast %cst_107 : f32 to vector<8x8xf32>
    %369 = arith.maximumf %368, %367 : vector<8x8xf32>
    %370 = vector.broadcast %cst_108 : f32 to vector<8x8xf32>
    %371 = arith.minimumf %370, %369 : vector<8x8xf32>
    %372 = tpu.concatenate %352, %371 in 1 : vector<8x8xf32>, vector<8x8xf32> -> vector<8x16xf32>
    %c0_109 = arith.constant 0 : index
    %c0_110 = arith.constant 0 : index
    %373 = vector.load %arg11[%c0_109, %c0_110] : memref<8x16xf32, #tpu.memory_space<vmem>>, vector<8x16xf32>
    tpu.vector_store %arg11[%c0_109, %c0_110], %372 {strides = array<i32>} : memref<8x16xf32, #tpu.memory_space<vmem>>, vector<8x16xf32>,
    return
  }
}

</mosaic_0001>

<bundles_post_ra>
// kernel: context_gru_forward.1
= control target key start
LH: loop header
LB: loop body
LE: loop exit
PB: predicated region body
PF: predicated region fallthrough
CT: control target
= control target key end

     0   :  { %16 = vsyncpa [#allocation4], 0  ;;  %s1982_s0 = inlined_call_operand.vmem [shape: f32[64,16], index: 0, kind: input, shape index: {}]   ;;  %s1983_s1 = inlined_call_operand.vmem [shape: f32[16,32], index: 1, kind: input, shape index: {}]   ;;  %s1984_s2 = inlined_call_operand.vmem [shape: f32[1,32], index: 2, kind: input, shape index: {}]   ;;  %s1985_s3 = inlined_call_operand.vmem [shape: f32[32,16], index: 3, kind: input, shape index: {}]   ;;  %s1986_s4 = inlined_call_operand.vmem [shape: f32[1,16], index: 4, kind: input, shape index: {}]   ;;  %s1987_s5 = inlined_call_operand.vmem [shape: f32[16,192], index: 5, kind: input, shape index: {}]   ;;  %s1988_s6 = inlined_call_operand.hbm [shape: f32[1,192], index: 6, kind: input, shape index: {}]   ;;  %s1989_s7 = inlined_call_operand.vmem [shape: f32[64,192], index: 7, kind: input, shape index: {}]   ;;  %s1990_s8 = inlined_call_operand.hbm [shape: f32[1,64], index: 8, kind: input, shape index: {}]   ;;  %s1991_s9 = inlined_call_operand.vmem [shape: f32[64,16], index: 9, kind: input, shape index: {}]   ;;  %s1992_s10 = inlined_call_operand.hbm [shape: f32[1,16], index: 10, kind: input, shape index: {}]   ;;  %s1993_s11 = inlined_call_operand.vmem [shape: f32[8,16], index: 11, kind: output, shape index: {}]  }
   0x1   :  { %17 = vsyncpa [#allocation6], 0  ;;  %s48_s19 = sshll.u32 %s1990_s8, 4  ;;  %s1360_s20 = smov [#allocation5]   ;;  %s49_s19 = int_to_ptr.hbm [resolvable:$true] %s48_s19 }
   0x2   :  { %s50_s21 = sshll.u32 %s1360_s20, 4  ;;  %s35_s24 = sshll.u32 %s1988_s6, 4  ;;  %s51_s21 = int_to_ptr.vmem [resolvable:$true] %s50_s21  ;;  %s36_s24 = int_to_ptr.hbm [resolvable:$true] %s35_s24 }
   0x3   :  { %53 = dma.hbm_to_vmem [thread:$0]  %s49_s19, 16, %s51_s21, [#allocation6]  }
   0x4   :  { %s1361_s25 = smov [#allocation3]   ;;  %s61_s29 = sshll.u32 %s1992_s10, 4  ;;  %s62_s29 = int_to_ptr.hbm [resolvable:$true] %s61_s29 }
   0x5   :  { %s37_s26 = sshll.u32 %s1361_s25, 4  ;;  %s1362_s8 = smov [#allocation7]   ;;  %s38_s26 = int_to_ptr.vmem [resolvable:$true] %s37_s26 }
   0x6   :  { %40 = dma.hbm_to_vmem [thread:$0]  %s36_s24, 32, %s38_s26, [#allocation4]  }
   0x7   :  { %s63_s30 = sshll.u32 %s1362_s8, 4  ;;  %s64_s30 = int_to_ptr.vmem [resolvable:$true] %s63_s30 }
   0x8   :  { %66 = dma.hbm_to_vmem [thread:$0]  %s62_s29, 16, %s64_s30, [#allocation6]  }
   0x9   :  { %1356 = dma.done.wait [#allocation4], 32  }
   0xa   :  { %1357 = vsyncadd [#allocation4], 4294967264 }
   0xb   :  { %1358 = dma.done.wait [#allocation6], 32  }
   0xc   :  { %1359 = vsyncadd [#allocation6], 4294967264  ;;  %v88_v0 = vld [vmem:[%s1983_s1 + $0x8] sm:$0xff]  ;;  %v87_v1 = vld [vmem:[%s1983_s1] sm:$0xff]  ;;  %vm93_vm0 = vcmask 130048   ;;  %vm175_vm1 = vcmask 261120  }
   0xd   :  { %132 = vmatpush.msra.mxu0 %v88_v0  ;;  %v79_v2 = vld [vmem:[%s1982_s0] sm:$0xff]  ;;  %1221 = vmatpush.msra.mxu2 %v88_v0  ;;  %v80_v3 = vld [vmem:[%s1982_s0 + $0x8] sm:$0xff]  ;;  %v81_v4 = vld [vmem:[%s1982_s0 + $0x10] sm:$0xff]  ;;  %vm358_vm2 = vcmask 523264  }
   0xe   :  { %v86_v5 = vld [vmem:[%s1982_s0 + $0x38] sm:$0xff]  ;;  %v83_v8 = vld [vmem:[%s1982_s0 + $0x20] sm:$0xff]  ;;  %v84_v9 = vld [vmem:[%s1982_s0 + $0x28] sm:$0xff] }
   0xf   :  { %133 = vmatpush.msra.mxu0 %v87_v1  ;;  %1222 = vmatpush.msra.mxu2 %v87_v1  ;;  %v170_v6 = vld [vmem:[%s1985_s3 + $0x18] sm:$0xff]  ;;  %v85_v10 = vld [vmem:[%s1982_s0 + $0x30] sm:$0xff]  ;;  %v168_v12 = vld [vmem:[%s1985_s3 + $0x8] sm:$0xff] }
  0x10   :  { %1166 = vmatmul.msk.f32.vlgmr.msra.gmra.mxu0 %vm93_vm0, %v79_v2  ;;  %1173 = vmatmul.msk.f32.vlgmr.msra.gmra.mxu2 %vm93_vm0, %v86_v5  ;;  %v82_v7 = vld [vmem:[%s1982_s0 + $0x18] sm:$0xff]  ;;  %v169_v11 = vld [vmem:[%s1985_s3 + $0x10] sm:$0xff]  ;;  %v167_v13 = vld [vmem:[%s1985_s3] sm:$0xff] }
  0x11   :  { %212 = vmatpush.msra.mxu1 %v170_v6  ;;  %v1228_v14 = vld [vmem:[%s1984_s2] ss:$0 sm:$0xff]  ;;  %v243_v27 = vld [vmem:[%s1987_s5 + $0x10] sm:$0xff]  ;;  %v244_v41 = vld [vmem:[%s1987_s5 + $0x18] sm:$0xff] }
  0x12   :  { %v241_v28 = vld [vmem:[%s1987_s5] sm:$0xff]  ;;  %289 = vmatpush.msrb.mxu2 %v243_v27  ;;  %330 = vmatpush.msra.mxu3 %v244_v41  ;;  %v242_v42 = vld [vmem:[%s1987_s5 + $0x8] sm:$0xff]  ;;  %v1510_v43 = vld [vmem:[%s1989_s7 + $0x70] sm:$0xff] }
  0x13   :  { %213 = vmatpush.msra.mxu1 %v169_v11  ;;  %446 = vmatpush.msrb.mxu0 %v1510_v43  ;;  %v1517_v44 = vld [vmem:[%s1989_s7 + $0x60] sm:$0xff]  ;;  %v1530_v48 = vld [vmem:[%s1989_s7 + $0x50] sm:$0xff]  ;;  %v1535_v49 = vld [vmem:[%s1989_s7 + $0x78] sm:$0xff] }
  0x14   :  { %290 = vmatpush.msrb.mxu2 %v241_v28  ;;  %331 = vmatpush.msra.mxu3 %v242_v42  ;;  %v1524_v45 = vld [vmem:[%s1986_s4] ss:$0 sm:$0xff]  ;;  %v1552_v53 = vld [vmem:[%s1989_s7 + $0x68] sm:$0xff]  ;;  %v1564_v56 = vld [vmem:[%s1989_s7 + $0x30] sm:$0xff]  ;;  %v394_v28 = vlaneseq }
  0x15   :  { %214 = vmatpush.msra.mxu1 %v168_v12  ;;  %447 = vmatpush.msrb.mxu0 %v1517_v44  ;;  %v1547_v52 = vld [vmem:[%s1989_s7 + $0x40] sm:$0xff]  ;;  %v1569_v57 = vld [vmem:[%s1989_s7 + $0x58] sm:$0xff]  ;;  %v1588_v61 = vld [vmem:[%s1989_s7 + $0x48] sm:$0xff] }
  0x16   :  { %535 = vmatpush.msrb.mxu3 %v1510_v43  ;;  %466 = vmatpush.msra.mxu2 %v1535_v49  ;;  %v1578_v58 = vld [vmem:[%s1989_s7 + $0x20] sm:$0xff]  ;;  %v1597_v62 = vld [vmem:[%s1989_s7 + $0x10] sm:$0xff]  ;;  %v1602_v63 = vld [vmem:[%s1989_s7 + $0x38] sm:$0xff] }
  0x17   :  { %215 = vmatpush.msra.mxu1 %v167_v13  ;;  %448 = vmatpush.msrb.mxu0 %v1530_v48  ;;  %v1607_v0 = vld [vmem:[%s1989_s7] sm:$0xff]  ;;  %v1614_v1 = vld [vmem:[%s1989_s7 + $0x28] sm:$0xff]  ;;  %v1619_v2 = vld [vmem:[%s1989_s7 + $0x18] sm:$0xff] }
  0x18   :  { %1167 = vmatmul.msk.f32.gmra.mxu0 %vm93_vm0, %v80_v3  ;;  %536 = vmatpush.msrb.mxu3 %v1517_v44  ;;  %v1363_v3 = vmov 0.0   ;;  %v245_v13 = vld [vmem:[#allocation3] sm:$0x3] }
  0x19   :  { %555 = vmatpush.msrb.mxu1 %v1535_v49  ;;  %449 = vmatpush.msrb.mxu0 %v1547_v52 }
  0x1a   :  { %537 = vmatpush.msrb.mxu3 %v1530_v48  ;;  %467 = vmatpush.msra.mxu2 %v1552_v53 }
  0x1b   :  { %556 = vmatpush.msrb.mxu1 %v1552_v53  ;;  %450 = vmatpush.msrb.mxu0 %v1564_v56 }
  0x1c   :  { %538 = vmatpush.msrb.mxu3 %v1547_v52  ;;  %468 = vmatpush.msra.mxu2 %v1569_v57 }
  0x1d   :  { %451 = vmatpush.msrb.mxu0 %v1578_v58  ;;  %557 = vmatpush.msrb.mxu1 %v1569_v57 }
  0x1e   :  { %539 = vmatpush.msrb.mxu3 %v1564_v56  ;;  %469 = vmatpush.msra.mxu2 %v1588_v61 }
  0x1f   :  { %558 = vmatpush.msrb.mxu1 %v1588_v61  ;;  %452 = vmatpush.msrb.mxu0 %v1597_v62 }
  0x20   :  { %1168 = vmatmul.msk.f32.gmra.mxu0 %vm93_vm0, %v81_v4  ;;  %540 = vmatpush.msrb.mxu3 %v1578_v58  ;;  %v1629_v4 = vld [vmem:[%s1989_s7 + $0x8] sm:$0xff]  ;;  %s1364_s7 = smov 64  }
  0x21   :  { %470 = vmatpush.msra.mxu2 %v1602_v63  ;;  %559 = vmatpush.msrb.mxu1 %v1602_v63 }
  0x22   :  { %541 = vmatpush.msrb.mxu3 %v1597_v62  ;;  %453 = vmatpush.msrb.mxu0 %v1607_v0 }
  0x23   :  { %471 = vmatpush.msra.mxu2 %v1614_v1  ;;  %560 = vmatpush.msrb.mxu1 %v1614_v1 }
  0x24   :  { %542 = vmatpush.msrb.mxu3 %v1607_v0  ;;  %624 = vmatpush.msra.mxu0 %v1510_v43 }
  0x25   :  { %472 = vmatpush.msra.mxu2 %v1619_v2  ;;  %561 = vmatpush.msrb.mxu1 %v1619_v2 }
  0x26   :  { %625 = vmatpush.msra.mxu0 %v1517_v44 }
  0x27   :  { %473 = vmatpush.msra.mxu2 %v1629_v4  ;;  %562 = vmatpush.msrb.mxu1 %v1629_v4 }
  0x28   :  { %1169 = vmatmul.msk.f32.gmra.mxu0 %vm93_vm0, %v82_v7 }
  0x29   :  { %626 = vmatpush.msra.mxu0 %v1530_v48 }
  0x2b   :  { %627 = vmatpush.msra.mxu0 %v1547_v52 }
  0x2d   :  { %628 = vmatpush.msra.mxu0 %v1564_v56 }
  0x2f   :  { %629 = vmatpush.msra.mxu0 %v1578_v58 }
  0x30   :  { %1170 = vmatmul.msk.f32.gmra.mxu0 %vm93_vm0, %v83_v8 }
  0x31   :  { %630 = vmatpush.msra.mxu0 %v1597_v62 }
  0x33   :  { %631 = vmatpush.msra.mxu0 %v1607_v0 }
  0x38   :  { %1171 = vmatmul.msk.f32.gmra.mxu0 %vm93_vm0, %v84_v9 }
  0x40   :  { %1172 = vmatmul.msk.f32.gmra.mxu0 %vm93_vm0, %v85_v10 }
  0x48   :  { %454 = vmatmul.f32.vlgmr.msrb.gmra.mxu0 %v1363_v3 }
  0x49   :  { %792 = vmatpush.msrb.mxu0 %v1510_v43 }
  0x4b   :  { %793 = vmatpush.msrb.mxu0 %v1517_v44 }
  0x4d   :  { %794 = vmatpush.msrb.mxu0 %v1530_v48 }
  0x4f   :  { %795 = vmatpush.msrb.mxu0 %v1547_v52 }
  0x51   :  { %796 = vmatpush.msrb.mxu0 %v1564_v56 }
  0x53   :  { %797 = vmatpush.msrb.mxu0 %v1578_v58 }
  0x55   :  { %798 = vmatpush.msrb.mxu0 %v1597_v62 }
  0x57   :  { %799 = vmatpush.msrb.mxu0 %v1607_v0 }
  0x8d   :  { %v135_v15 = vpop.f32.mrf.mxu0 }
  0x8e   :  { %v136_v16 = vadd.f32 %v1228_v14, %v135_v15  ;;  %v248_v15 = vperm.slane %v245_v13, 1 }
  0x90   :  { %v159_v17 = vmax.f32 %v136_v16, 0.0 }
  0x92   :  { %1174 = vmatmul.msk.f32.vlgmr.msra.gmra.mxu1 %vm175_vm1, %v159_v17 }
  0x93   :  { %v156_v37 = vpop.f32.mrf.mxu2  ;;  %733 = vmatpush.msra.mxu1 %v1535_v49 }
  0x94   :  { %v157_v39 = vadd.f32 %v1228_v14, %v156_v37 }
  0x95   :  { %v138_v18 = vpop.f32.mrf.mxu0  ;;  %734 = vmatpush.msra.mxu1 %v1552_v53 }
  0x96   :  { %v139_v19 = vadd.f32 %v1228_v14, %v138_v18  ;;  %v166_v40 = vmax.f32 %v157_v39, 0.0 }
  0x97   :  { %735 = vmatpush.msra.mxu1 %v1569_v57 }
  0x98   :  { %v160_v20 = vmax.f32 %v139_v19, 0.0 }
  0x99   :  { %736 = vmatpush.msra.mxu1 %v1588_v61 }
  0x9a   :  { %1175 = vmatmul.msk.f32.gmra.mxu1 %vm175_vm1, %v160_v20 }
  0x9b   :  { %737 = vmatpush.msra.mxu1 %v1602_v63 }
  0x9d   :  { %v141_v21 = vpop.f32.mrf.mxu0  ;;  %738 = vmatpush.msra.mxu1 %v1614_v1 }
  0x9e   :  { %v142_v22 = vadd.f32 %v1228_v14, %v141_v21 }
  0x9f   :  { %739 = vmatpush.msra.mxu1 %v1619_v2 }
  0xa0   :  { %v161_v23 = vmax.f32 %v142_v22, 0.0 }
  0xa1   :  { %740 = vmatpush.msra.mxu1 %v1629_v4 }
  0xa2   :  { %1176 = vmatmul.msk.f32.gmra.mxu1 %vm175_vm1, %v161_v23 }
  0xa5   :  { %v144_v24 = vpop.f32.mrf.mxu0 }
  0xa6   :  { %v145_v25 = vadd.f32 %v1228_v14, %v144_v24 }
  0xa8   :  { %v162_v26 = vmax.f32 %v145_v25, 0.0 }
  0xaa   :  { %1177 = vmatmul.msk.f32.gmra.mxu1 %vm175_vm1, %v162_v26 }
  0xad   :  { %v147_v29 = vpop.f32.mrf.mxu0 }
  0xae   :  { %v148_v30 = vadd.f32 %v1228_v14, %v147_v29 }
  0xb0   :  { %v163_v31 = vmax.f32 %v148_v30, 0.0 }
  0xb2   :  { %1178 = vmatmul.msk.f32.gmra.mxu1 %vm175_vm1, %v163_v31  ;;  %v395_v31 = vand.u32 127, %v394_v28 }
  0xb5   :  { %v150_v32 = vpop.f32.mrf.mxu0 }
  0xb6   :  { %v151_v33 = vadd.f32 %v1228_v14, %v150_v32 }
  0xb8   :  { %v164_v34 = vmax.f32 %v151_v33, 0.0 }
  0xba   :  { %1179 = vmatmul.msk.f32.gmra.mxu1 %vm175_vm1, %v164_v34  ;;  %v401_v34 = vand.u32 63, %v395_v31 }
  0xbc   :  { %vm1710_vm3 = vcmp.lt.s32.totalorder %v401_v34, 32 }
  0xbd   :  { %v153_v35 = vpop.f32.mrf.mxu0 }
  0xbe   :  { %v154_v36 = vadd.f32 %v1228_v14, %v153_v35  ;;  %v247_v14 = vperm.slane %v245_v13, 0 }
  0xc0   :  { %v165_v38 = vmax.f32 %v154_v36, 0.0 }
  0xc2   :  { %1180 = vmatmul.msk.f32.gmra.mxu1 %vm175_vm1, %v165_v38 }
  0xca   :  { %1181 = vmatmul.msk.f32.gmra.mxu1 %vm175_vm1, %v166_v40  ;;  %v396_v40 = vadd.s32 128, %v395_v31 }
 0x10f   :  { %v217_v46 = vpop.f32.mrf.mxu1 }
 0x110   :  { %v218_v47 = vadd.f32 %v1524_v45, %v217_v46 }
 0x112   :  { %1182 = vmatmul.msk.f32.vlgmr.msrb.gmra.mxu2 %vm93_vm0, %v218_v47  ;;  %1190 = vmatmul.msk.f32.vlgmr.msra.gmra.mxu3 %vm93_vm0, %v218_v47 }
 0x113   :  { %713 = vmatpush.msra.mxu3 %v1510_v43  ;;  %644 = vmatpush.msrb.mxu2 %v1535_v49 }
 0x115   :  { %645 = vmatpush.msrb.mxu2 %v1552_v53  ;;  %714 = vmatpush.msra.mxu3 %v1517_v44 }
 0x117   :  { %v220_v50 = vpop.f32.mrf.mxu1  ;;  %646 = vmatpush.msrb.mxu2 %v1569_v57  ;;  %715 = vmatpush.msra.mxu3 %v1530_v48 }
 0x118   :  { %v221_v51 = vadd.f32 %v1524_v45, %v220_v50 }
 0x119   :  { %647 = vmatpush.msrb.mxu2 %v1588_v61  ;;  %716 = vmatpush.msra.mxu3 %v1547_v52 }
 0x11a   :  { %1183 = vmatmul.msk.f32.gmra.mxu2 %vm93_vm0, %v221_v51  ;;  %1191 = vmatmul.msk.f32.gmra.mxu3 %vm93_vm0, %v221_v51 }
 0x11b   :  { %648 = vmatpush.msrb.mxu2 %v1602_v63  ;;  %717 = vmatpush.msra.mxu3 %v1564_v56 }
 0x11d   :  { %649 = vmatpush.msrb.mxu2 %v1614_v1  ;;  %718 = vmatpush.msra.mxu3 %v1578_v58 }
 0x11f   :  { %v223_v54 = vpop.f32.mrf.mxu1  ;;  %650 = vmatpush.msrb.mxu2 %v1619_v2  ;;  %719 = vmatpush.msra.mxu3 %v1597_v62 }
 0x120   :  { %v224_v55 = vadd.f32 %v1524_v45, %v223_v54  ;;  %v1098_v54 = vld [vmem:[%s1991_s9 + $0x28] sm:$0xff] }
 0x121   :  { %651 = vmatpush.msrb.mxu2 %v1629_v4  ;;  %720 = vmatpush.msra.mxu3 %v1607_v0 }
 0x122   :  { %1184 = vmatmul.msk.f32.gmra.mxu2 %vm93_vm0, %v224_v55  ;;  %1192 = vmatmul.msk.f32.gmra.mxu3 %vm93_vm0, %v224_v55 }
 0x127   :  { %v226_v59 = vpop.f32.mrf.mxu1 }
 0x128   :  { %v227_v60 = vadd.f32 %v1524_v45, %v226_v59 }
 0x12a   :  { %1185 = vmatmul.msk.f32.gmra.mxu2 %vm93_vm0, %v227_v60  ;;  %1193 = vmatmul.msk.f32.gmra.mxu3 %vm93_vm0, %v227_v60 }
 0x12f   :  { %v229_v5 = vpop.f32.mrf.mxu1 }
 0x130   :  { %v230_v6 = vadd.f32 %v1524_v45, %v229_v5 }
 0x132   :  { %1186 = vmatmul.msk.f32.gmra.mxu2 %vm93_vm0, %v230_v6  ;;  %1194 = vmatmul.msk.f32.gmra.mxu3 %vm93_vm0, %v230_v6 }
 0x137   :  { %v232_v7 = vpop.f32.mrf.mxu1 }
 0x138   :  { %v233_v8 = vadd.f32 %v1524_v45, %v232_v7 }
 0x13a   :  { %1187 = vmatmul.msk.f32.gmra.mxu2 %vm93_vm0, %v233_v8  ;;  %1195 = vmatmul.msk.f32.gmra.mxu3 %vm93_vm0, %v233_v8 }
 0x13f   :  { %v235_v9 = vpop.f32.mrf.mxu1 }
 0x140   :  { %v236_v10 = vadd.f32 %v1524_v45, %v235_v9 }
 0x142   :  { %1188 = vmatmul.msk.f32.gmra.mxu2 %vm93_vm0, %v236_v10  ;;  %1196 = vmatmul.msk.f32.gmra.mxu3 %vm93_vm0, %v236_v10 }
 0x147   :  { %v238_v11 = vpop.f32.mrf.mxu1 }
 0x148   :  { %v239_v12 = vadd.f32 %v1524_v45, %v238_v11  ;;  %v408_v45 = vand.u32 63, %v396_v40  ;;  %v1794_v40 = vld [vmem:[#allocation5] ss:$0 sm:$0xff] }
 0x14a   :  { %1189 = vmatmul.msk.f32.gmra.mxu2 %vm93_vm0, %v239_v12  ;;  %1197 = vmatmul.msk.f32.gmra.mxu3 %vm93_vm0, %v239_v12  ;;  %vm1727_vm4 = vcmp.lt.s32.totalorder %v408_v45, 32 }
 0x152   :  { %474 = vmatmul.f32.vlgmr.msra.gmra.mxu2 %v1363_v3 }
 0x153   :  { %812 = vmatpush.msra.mxu2 %v1535_v49 }
 0x155   :  { %813 = vmatpush.msra.mxu2 %v1552_v53 }
 0x157   :  { %814 = vmatpush.msra.mxu2 %v1569_v57 }
 0x159   :  { %815 = vmatpush.msra.mxu2 %v1588_v61 }
 0x15b   :  { %816 = vmatpush.msra.mxu2 %v1602_v63 }
 0x15d   :  { %817 = vmatpush.msra.mxu2 %v1614_v1 }
 0x15f   :  { %818 = vmatpush.msra.mxu2 %v1619_v2 }
 0x161   :  { %819 = vmatpush.msra.mxu2 %v1629_v4 }
 0x195   :  { %v292_v16 = vpop.f32.mrf.mxu2  ;;  %v333_v17 = vpop.f32.mrf.mxu3 }
 0x196   :  { %v1698_v18 = vadd.f32 %v292_v16, %v247_v14  ;;  %v334_v19 = vadd.f32 %v333_v17, %v248_v15 }
 0x198   :  { %359 = vst.msk [vmem:[#allocation2 + $0x8] sm:$0xff] %vm358_vm2, %v334_v19 }
 0x19d   :  { %v295_v20 = vpop.f32.mrf.mxu2  ;;  %v336_v21 = vpop.f32.mrf.mxu3 }
 0x19e   :  { %v1701_v22 = vadd.f32 %v295_v20, %v247_v14  ;;  %v337_v23 = vadd.f32 %v336_v21, %v248_v15 }
 0x1a0   :  { %361 = vst.msk [vmem:[#allocation2 + $0x18] sm:$0xff] %vm358_vm2, %v337_v23  ;;  %v455_v23 = vpop.f32.mrf.mxu0 }
 0x1a5   :  { %v298_v24 = vpop.f32.mrf.mxu2  ;;  %v339_v25 = vpop.f32.mrf.mxu3 }
 0x1a6   :  { %v1704_v26 = vadd.f32 %v298_v24, %v247_v14  ;;  %v340_v27 = vadd.f32 %v339_v25, %v248_v15 }
 0x1a7   :  { %v1773_v25 = vld [vmem:[#allocation2 + $0x18] sm:$0xff] }
 0x1a8   :  { %363 = vst.msk [vmem:[#allocation2 + $0x28] sm:$0xff] %vm358_vm2, %v340_v27 }
 0x1ad   :  { %v301_v29 = vpop.f32.mrf.mxu2  ;;  %v342_v30 = vpop.f32.mrf.mxu3 }
 0x1ae   :  { %v1707_v32 = vadd.f32 %v301_v29, %v247_v14  ;;  %v343_v33 = vadd.f32 %v342_v30, %v248_v15  ;;  %v1786_v30 = vld [vmem:[#allocation2 + $0x8] sm:$0xff] }
 0x1af   :  { %v1754_v11 = vld [vmem:[#allocation2 + $0x28] sm:$0xff] }
 0x1b0   :  { %365 = vst.msk [vmem:[#allocation2 + $0x38] sm:$0xff] %vm358_vm2, %v343_v33 }
 0x1b5   :  { %v304_v35 = vpop.f32.mrf.mxu2  ;;  %v345_v36 = vpop.f32.mrf.mxu3 }
 0x1b6   :  { %v1714_v38 = vadd.f32 %v304_v35, %v247_v14  ;;  %v346_v39 = vadd.f32 %v345_v36, %v248_v15 }
 0x1b7   :  { %v1735_v59 = vld [vmem:[#allocation2 + $0x38] sm:$0xff] }
 0x1b8   :  { %v698_v41 = vsel %vm1710_vm3, %v1707_v32, %v1714_v38  ;;  %v777_v42 = vsel %vm1710_vm3, %v1714_v38, %v1707_v32  ;;  %367 = vst.msk [vmem:[#allocation2 + $0x48] sm:$0xff] %vm358_vm2, %v346_v39 }
 0x1bd   :  { %v307_v46 = vpop.f32.mrf.mxu2  ;;  %v348_v47 = vpop.f32.mrf.mxu3 }
 0x1be   :  { %v1725_v50 = vadd.f32 %v307_v46, %v247_v14  ;;  %v349_v51 = vadd.f32 %v348_v47, %v248_v15 }
 0x1bf   :  { %v1737_v60 = vld [vmem:[#allocation2 + $0x48] sm:$0xff] }
 0x1c0   :  { %v609_v55 = vsel %vm1710_vm3, %v1704_v26, %v1725_v50  ;;  %v856_v3 = vsel %vm1710_vm3, %v1725_v50, %v1704_v26  ;;  %369 = vst.msk [vmem:[#allocation2 + $0x58] sm:$0xff] %vm358_vm2, %v349_v51  ;;  %v778_v5 = vsel %vm1727_vm4, %v1737_v60, %v1735_v59 }
 0x1c5   :  { %v310_v6 = vpop.f32.mrf.mxu2  ;;  %v351_v7 = vpop.f32.mrf.mxu3 }
 0x1c6   :  { %v1748_v8 = vadd.f32 %v310_v6, %v247_v14  ;;  %v352_v9 = vadd.f32 %v351_v7, %v248_v15 }
 0x1c7   :  { %v1756_v12 = vld [vmem:[#allocation2 + $0x58] sm:$0xff] }
 0x1c8   :  { %v520_v10 = vsel %vm1710_vm3, %v1701_v22, %v1748_v8  ;;  %v935_v13 = vsel %vm1710_vm3, %v1748_v8, %v1701_v22  ;;  %371 = vst.msk [vmem:[#allocation2 + $0x68] sm:$0xff] %vm358_vm2, %v352_v9  ;;  %v857_v16 = vsel %vm1727_vm4, %v1756_v12, %v1754_v11 }
 0x1cd   :  { %v313_v17 = vpop.f32.mrf.mxu2  ;;  %v354_v19 = vpop.f32.mrf.mxu3 }
 0x1ce   :  { %v1767_v20 = vadd.f32 %v313_v17, %v247_v14  ;;  %v355_v21 = vadd.f32 %v354_v19, %v248_v15 }
 0x1cf   :  { %v1775_v27 = vld [vmem:[#allocation2 + $0x68] sm:$0xff] }
 0x1d0   :  { %v433_v24 = vsel %vm1710_vm3, %v1698_v18, %v1767_v20  ;;  %v1014_v28 = vsel %vm1710_vm3, %v1767_v20, %v1698_v18  ;;  %373 = vst.msk [vmem:[#allocation2 + $0x78] sm:$0xff] %vm358_vm2, %v355_v21  ;;  %v936_v15 = vsel %vm1727_vm4, %v1775_v27, %v1773_v25 }
 0x1d1   :  { %v478_v14 = vadd.f32 %v455_v23, %v433_v24 }
 0x1d3   :  { %v1198_v29 = vmul.f32 -1.442695, %v478_v14 }
 0x1d5   :  { %1232 = vpow2.f32 %v1198_v29  ;;  %v475_v46 = vpop.f32.mrf.mxu2 }
 0x1d6   :  { %v498_v9 = vadd.f32 %v1794_v40, %v475_v46 }
 0x1d7   :  { %v1788_v31 = vld [vmem:[#allocation2 + $0x78] sm:$0xff] }
 0x1d8   :  { %v1015_v33 = vsel %vm1727_vm4, %v1788_v31, %v1786_v30  ;;  %v434_v24 = vsel %vm1727_vm4, %v1786_v30, %v1788_v31  ;;  %v1097_v30 = vld [vmem:[%s1991_s9 + $0x20] sm:$0xff]  ;;  %v1096_v31 = vld [vmem:[%s1991_s9 + $0x18] sm:$0xff] }
 0x1db   :  { %v1233_v34 = vpop.eup %1232 }
 0x1dc   :  { %v482_v35 = vadd.f32 1.0, %v1233_v34 }
 0x1de   :  { %1234 = vrcp.f32 %v482_v35  ;;  %v494_v47 = vand.u32 2147483648, %v482_v35  ;;  %v492_v6 = vand.u32 2147483647, %v482_v35  ;;  %vm488_vm6 = vweird.f32 %v482_v35 }
 0x1e0   :  { %v495_v17 = vor.u32 1.1754944e-38, %v494_v47  ;;  %vm493_vm8 = vcmp.eq.f32.partialorder %v492_v6, 8.507059e+37 }
 0x1e4   :  { %v1235_v36 = vpop.eup %1234 }
 0x1e5   :  { %v484_v39 = vmul.f32 %v1235_v36, %v482_v35  ;;  %vm489_vm5 = vweird.f32 %v1235_v36 }
 0x1e6   :  { %vm490_vm7 = vmor %vm488_vm6, %vm489_vm5 }
 0x1e7   :  { %v485_v45 = vsub.f32 1.0, %v484_v39 }
 0x1e9   :  { %v486_v51 = vmul.f32 %v1235_v36, %v485_v45 }
 0x1eb   :  { %v487_v7 = vadd.f32 %v1235_v36, %v486_v51 }
 0x1ed   :  { %v491_v19 = vsel %vm490_vm7, %v1235_v36, %v487_v7 }
 0x1ee   :  { %v496_v21 = vsel %vm493_vm8, %v495_v17, %v491_v19 }
 0x1ef   :  { %v499_v23 = vmul.f32 %v498_v9, %v496_v21  ;;  %v502_v34 = vsub.f32 1.0, %v496_v21  ;;  %v508_v39 = vmul.f32 0.0, %v496_v21 }
 0x1f1   :  { %v500_v14 = vadd.f32 %v499_v23, %v434_v24 }
 0x1f3   :  { %1236 = vtanh.f32 %v500_v14 }
 0x1f9   :  { %v1237_v29 = vpop.eup %1236 }
 0x1fa   :  { %504 = vrot.lane.b32.xlu0 %v1237_v29, %s1364_s7 }
 0x26c   :  { %v505_v35 = vpop.permute.xlu0 %504 }
 0x26d   :  { %v507_v45 = vmul.f32 %v505_v35, %v502_v34 }
 0x26f   :  { %v509_v46 = vadd.f32 %v508_v39, %v507_v45 }
 0x271   :  { %523 = vrot.lane.b32.xlu0 %v509_v46, %s1364_s7 }
 0x2e3   :  { %v524_v36 = vpop.permute.xlu0 %523 }
 0x2e4   :  { %1199 = vmatmul.msk.f32.vlgmr.msrb.gmra.mxu3 %vm358_vm2, %v524_v36  ;;  %1200 = vmatmul.msk.f32.vlgmr.msrb.gmra.mxu1 %vm358_vm2, %v524_v36 }
 0x2e5   :  { %871 = vmatpush.msrb.mxu3 %v1510_v43  ;;  %891 = vmatpush.msrb.mxu1 %v1535_v49 }
 0x2e7   :  { %872 = vmatpush.msrb.mxu3 %v1517_v44  ;;  %892 = vmatpush.msrb.mxu1 %v1552_v53 }
 0x2e9   :  { %873 = vmatpush.msrb.mxu3 %v1530_v48  ;;  %893 = vmatpush.msrb.mxu1 %v1569_v57 }
 0x2eb   :  { %874 = vmatpush.msrb.mxu3 %v1547_v52  ;;  %894 = vmatpush.msrb.mxu1 %v1588_v61 }
 0x2ed   :  { %875 = vmatpush.msrb.mxu3 %v1564_v56  ;;  %895 = vmatpush.msrb.mxu1 %v1602_v63 }
 0x2ef   :  { %876 = vmatpush.msrb.mxu3 %v1578_v58  ;;  %896 = vmatpush.msrb.mxu1 %v1614_v1 }
 0x2f1   :  { %877 = vmatpush.msrb.mxu3 %v1597_v62  ;;  %897 = vmatpush.msrb.mxu1 %v1619_v2 }
 0x2f3   :  { %878 = vmatpush.msrb.mxu3 %v1607_v0  ;;  %898 = vmatpush.msrb.mxu1 %v1629_v4 }
 0x361   :  { %v564_v29 = vpop.f32.mrf.mxu1 }
 0x362   :  { %v587_v39 = vadd.f32 %v1794_v40, %v564_v29 }
 0x367   :  { %v544_v47 = vpop.f32.mrf.mxu3 }
 0x368   :  { %v567_v51 = vadd.f32 %v544_v47, %v520_v10  ;;  %v521_v47 = vsel %vm1727_vm4, %v1773_v25, %v1775_v27 }
 0x36a   :  { %v1201_v6 = vmul.f32 -1.442695, %v567_v51 }
 0x36c   :  { %1238 = vpow2.f32 %v1201_v6 }
 0x372   :  { %v1239_v7 = vpop.eup %1238 }
 0x373   :  { %v571_v9 = vadd.f32 1.0, %v1239_v7 }
 0x375   :  { %1240 = vrcp.f32 %v571_v9  ;;  %v583_v23 = vand.u32 2147483648, %v571_v9  ;;  %v581_v14 = vand.u32 2147483647, %v571_v9  ;;  %vm577_vm10 = vweird.f32 %v571_v9 }
 0x377   :  { %v584_v35 = vor.u32 1.1754944e-38, %v583_v23  ;;  %vm582_vm12 = vcmp.eq.f32.partialorder %v581_v14, 8.507059e+37 }
 0x37b   :  { %v1241_v17 = vpop.eup %1240 }
 0x37c   :  { %v573_v19 = vmul.f32 %v1241_v17, %v571_v9  ;;  %vm578_vm9 = vweird.f32 %v1241_v17 }
 0x37d   :  { %vm579_vm11 = vmor %vm577_vm10, %vm578_vm9 }
 0x37e   :  { %v574_v21 = vsub.f32 1.0, %v573_v19 }
 0x380   :  { %v575_v24 = vmul.f32 %v1241_v17, %v574_v21 }
 0x382   :  { %v576_v34 = vadd.f32 %v1241_v17, %v575_v24 }
 0x384   :  { %v580_v10 = vsel %vm579_vm11, %v1241_v17, %v576_v34 }
 0x385   :  { %v585_v45 = vsel %vm582_vm12, %v584_v35, %v580_v10 }
 0x386   :  { %v588_v36 = vmul.f32 %v587_v39, %v585_v45  ;;  %v591_v7 = vsub.f32 1.0, %v585_v45  ;;  %v597_v19 = vmul.f32 %v585_v45, %v509_v46 }
 0x388   :  { %v589_v51 = vadd.f32 %v588_v36, %v521_v47 }
 0x38a   :  { %1242 = vtanh.f32 %v589_v51 }
 0x390   :  { %v1243_v6 = vpop.eup %1242 }
 0x391   :  { %593 = vrot.lane.b32.xlu1 %v1243_v6, %s1364_s7 }
 0x403   :  { %v594_v9 = vpop.permute.xlu1 %593 }
 0x404   :  { %v596_v21 = vmul.f32 %v594_v9, %v591_v7 }
 0x406   :  { %v598_v23 = vadd.f32 %v597_v19, %v596_v21 }
 0x408   :  { %612 = vrot.lane.b32.xlu1 %v598_v23, %s1364_s7 }
 0x47a   :  { %v613_v17 = vpop.permute.xlu1 %612 }
 0x47b   :  { %1202 = vmatmul.msk.f32.vlgmr.msra.gmra.mxu0 %vm358_vm2, %v613_v17  ;;  %1203 = vmatmul.msk.f32.vlgmr.msrb.gmra.mxu2 %vm358_vm2, %v613_v17  ;;  %v610_v17 = vsel %vm1727_vm4, %v1754_v11, %v1756_v12 }
 0x47c   :  { %950 = vmatpush.msra.mxu0 %v1510_v43  ;;  %970 = vmatpush.msrb.mxu2 %v1535_v49 }
 0x47e   :  { %951 = vmatpush.msra.mxu0 %v1517_v44  ;;  %971 = vmatpush.msrb.mxu2 %v1552_v53 }
 0x480   :  { %952 = vmatpush.msra.mxu0 %v1530_v48  ;;  %972 = vmatpush.msrb.mxu2 %v1569_v57 }
 0x482   :  { %953 = vmatpush.msra.mxu0 %v1547_v52  ;;  %973 = vmatpush.msrb.mxu2 %v1588_v61 }
 0x484   :  { %954 = vmatpush.msra.mxu0 %v1564_v56  ;;  %974 = vmatpush.msrb.mxu2 %v1602_v63 }
 0x486   :  { %955 = vmatpush.msra.mxu0 %v1578_v58  ;;  %975 = vmatpush.msrb.mxu2 %v1614_v1 }
 0x488   :  { %956 = vmatpush.msra.mxu0 %v1597_v62  ;;  %976 = vmatpush.msrb.mxu2 %v1619_v2 }
 0x48a   :  { %957 = vmatpush.msra.mxu0 %v1607_v0  ;;  %977 = vmatpush.msrb.mxu2 %v1629_v4 }
 0x4f8   :  { %v633_v46 = vpop.f32.mrf.mxu0 }
 0x4f9   :  { %v656_v24 = vadd.f32 %v633_v46, %v609_v55 }
 0x4fb   :  { %v1204_v14 = vmul.f32 -1.442695, %v656_v24 }
 0x4fd   :  { %1244 = vpow2.f32 %v1204_v14 }
 0x4fe   :  { %v653_v51 = vpop.f32.mrf.mxu2 }
 0x4ff   :  { %v676_v55 = vadd.f32 %v1794_v40, %v653_v51 }
 0x503   :  { %v1245_v29 = vpop.eup %1244 }
 0x504   :  { %v660_v34 = vadd.f32 1.0, %v1245_v29 }
 0x506   :  { %1246 = vrcp.f32 %v660_v34  ;;  %v672_v45 = vand.u32 2147483648, %v660_v34  ;;  %v670_v47 = vand.u32 2147483647, %v660_v34  ;;  %vm666_vm14 = vweird.f32 %v660_v34 }
 0x508   :  { %v673_v7 = vor.u32 1.1754944e-38, %v672_v45  ;;  %vm671_vm1 = vcmp.eq.f32.partialorder %v670_v47, 8.507059e+37  ;;  %v699_v45 = vsel %vm1727_vm4, %v1735_v59, %v1737_v60 }
 0x50c   :  { %v1247_v35 = vpop.eup %1246 }
 0x50d   :  { %v662_v39 = vmul.f32 %v1247_v35, %v660_v34  ;;  %vm667_vm13 = vweird.f32 %v1247_v35 }
 0x50e   :  { %vm668_vm15 = vmor %vm666_vm14, %vm667_vm13 }
 0x50f   :  { %v663_v10 = vsub.f32 1.0, %v662_v39 }
 0x511   :  { %v664_v36 = vmul.f32 %v1247_v35, %v663_v10 }
 0x513   :  { %v665_v6 = vadd.f32 %v1247_v35, %v664_v36 }
 0x515   :  { %v669_v9 = vsel %vm668_vm15, %v1247_v35, %v665_v6 }
 0x516   :  { %v674_v19 = vsel %vm671_vm1, %v673_v7, %v669_v9 }
 0x517   :  { %v677_v21 = vmul.f32 %v676_v55, %v674_v19  ;;  %v680_v14 = vsub.f32 1.0, %v674_v19  ;;  %v686_v34 = vmul.f32 %v674_v19, %v598_v23 }
 0x519   :  { %v678_v46 = vadd.f32 %v677_v21, %v610_v17 }
 0x51b   :  { %1248 = vtanh.f32 %v678_v46 }
 0x521   :  { %v1249_v24 = vpop.eup %1248 }
 0x522   :  { %682 = vrot.lane.b32.xlu2 %v1249_v24, %s1364_s7 }
 0x57c   :  { %v683_v29 = vpop.permute.xlu2 %682 }
 0x57d   :  { %v685_v39 = vmul.f32 %v683_v29, %v680_v14 }
 0x57f   :  { %v687_v35 = vadd.f32 %v686_v34, %v685_v39 }
 0x581   :  { %701 = vrot.lane.b32.xlu2 %v687_v35, %s1364_s7 }
 0x5db   :  { %v702_v10 = vpop.permute.xlu2 %701 }
 0x5dc   :  { %1205 = vmatmul.msk.f32.vlgmr.msra.gmra.mxu3 %vm358_vm2, %v702_v10  ;;  %1206 = vmatmul.msk.f32.vlgmr.msra.gmra.mxu1 %vm358_vm2, %v702_v10 }
 0x5dd   :  { %1029 = vmatpush.msra.mxu3 %v1510_v43  ;;  %1049 = vmatpush.msra.mxu1 %v1535_v49 }
 0x5df   :  { %1030 = vmatpush.msra.mxu3 %v1517_v44  ;;  %1050 = vmatpush.msra.mxu1 %v1552_v53 }
 0x5e1   :  { %1031 = vmatpush.msra.mxu3 %v1530_v48  ;;  %1051 = vmatpush.msra.mxu1 %v1569_v57 }
 0x5e3   :  { %1032 = vmatpush.msra.mxu3 %v1547_v52  ;;  %1052 = vmatpush.msra.mxu1 %v1588_v61 }
 0x5e5   :  { %1033 = vmatpush.msra.mxu3 %v1564_v56  ;;  %1053 = vmatpush.msra.mxu1 %v1602_v63 }
 0x5e7   :  { %1034 = vmatpush.msra.mxu3 %v1578_v58  ;;  %1054 = vmatpush.msra.mxu1 %v1614_v1 }
 0x5e9   :  { %1035 = vmatpush.msra.mxu3 %v1597_v62  ;;  %1055 = vmatpush.msra.mxu1 %v1619_v2 }
 0x5eb   :  { %1036 = vmatpush.msra.mxu3 %v1607_v0  ;;  %1056 = vmatpush.msra.mxu1 %v1629_v4 }
 0x659   :  { %v742_v63 = vpop.f32.mrf.mxu1 }
 0x65a   :  { %v765_v2 = vadd.f32 %v1794_v40, %v742_v63 }
 0x65f   :  { %v722_v43 = vpop.f32.mrf.mxu3 }
 0x660   :  { %v745_v44 = vadd.f32 %v722_v43, %v698_v41 }
 0x662   :  { %v1207_v48 = vmul.f32 -1.442695, %v745_v44 }
 0x664   :  { %1250 = vpow2.f32 %v1207_v48 }
 0x66a   :  { %v1251_v49 = vpop.eup %1250 }
 0x66b   :  { %v749_v52 = vadd.f32 1.0, %v1251_v49 }
 0x66d   :  { %1252 = vrcp.f32 %v749_v52  ;;  %v761_v58 = vand.u32 2147483648, %v749_v52  ;;  %v759_v62 = vand.u32 2147483647, %v749_v52  ;;  %vm755_vm6 = vweird.f32 %v749_v52 }
 0x66f   :  { %v762_v1 = vor.u32 1.1754944e-38, %v761_v58  ;;  %vm760_vm8 = vcmp.eq.f32.partialorder %v759_v62, 8.507059e+37 }
 0x673   :  { %v1253_v53 = vpop.eup %1252 }
 0x674   :  { %v751_v56 = vmul.f32 %v1253_v53, %v749_v52  ;;  %vm756_vm5 = vweird.f32 %v1253_v53 }
 0x675   :  { %vm757_vm7 = vmor %vm755_vm6, %vm756_vm5 }
 0x676   :  { %v752_v57 = vsub.f32 1.0, %v751_v56 }
 0x678   :  { %v753_v61 = vmul.f32 %v1253_v53, %v752_v57 }
 0x67a   :  { %v754_v0 = vadd.f32 %v1253_v53, %v753_v61 }
 0x67c   :  { %v758_v4 = vsel %vm757_vm7, %v1253_v53, %v754_v0 }
 0x67d   :  { %v763_v41 = vsel %vm760_vm8, %v762_v1, %v758_v4 }
 0x67e   :  { %v766_v23 = vmul.f32 %v765_v2, %v763_v41  ;;  %v769_v51 = vsub.f32 1.0, %v763_v41  ;;  %v775_v7 = vmul.f32 %v763_v41, %v687_v35 }
 0x680   :  { %v767_v36 = vadd.f32 %v766_v23, %v699_v45 }
 0x682   :  { %1254 = vtanh.f32 %v767_v36 }
 0x688   :  { %v1255_v47 = vpop.eup %1254 }
 0x689   :  { %771 = vrot.lane.b32.xlu0 %v1255_v47, %s1364_s7 }
 0x6fb   :  { %v772_v6 = vpop.permute.xlu0 %771 }
 0x6fc   :  { %v774_v9 = vmul.f32 %v772_v6, %v769_v51 }
 0x6fe   :  { %v776_v55 = vadd.f32 %v775_v7, %v774_v9 }
 0x700   :  { %780 = vrot.lane.b32.xlu1 %v776_v55, %s1364_s7 }
 0x772   :  { %v781_v19 = vpop.permute.xlu1 %780 }
 0x773   :  { %1208 = vmatmul.msk.f32.vlgmr.msrb.gmra.mxu0 %vm358_vm2, %v781_v19  ;;  %1209 = vmatmul.msk.f32.vlgmr.msra.gmra.mxu2 %vm358_vm2, %v781_v19 }
 0x7f0   :  { %v801_v21 = vpop.f32.mrf.mxu0 }
 0x7f1   :  { %v824_v17 = vadd.f32 %v801_v21, %v777_v42 }
 0x7f3   :  { %v1210_v46 = vmul.f32 -1.442695, %v824_v17 }
 0x7f5   :  { %1256 = vpow2.f32 %v1210_v46 }
 0x7f6   :  { %v821_v44 = vpop.f32.mrf.mxu2 }
 0x7f7   :  { %v844_v32 = vadd.f32 %v1794_v40, %v821_v44 }
 0x7fb   :  { %v1257_v24 = vpop.eup %1256 }
 0x7fc   :  { %v828_v14 = vadd.f32 1.0, %v1257_v24 }
 0x7fe   :  { %1258 = vrcp.f32 %v828_v14  ;;  %v840_v35 = vand.u32 2147483648, %v828_v14  ;;  %v838_v43 = vand.u32 2147483647, %v828_v14  ;;  %vm834_vm10 = vweird.f32 %v828_v14 }
 0x800   :  { %v841_v49 = vor.u32 1.1754944e-38, %v840_v35  ;;  %vm839_vm12 = vcmp.eq.f32.partialorder %v838_v43, 8.507059e+37 }
 0x804   :  { %v1259_v29 = vpop.eup %1258 }
 0x805   :  { %v830_v34 = vmul.f32 %v1259_v29, %v828_v14  ;;  %vm835_vm9 = vweird.f32 %v1259_v29 }
 0x806   :  { %vm836_vm11 = vmor %vm834_vm10, %vm835_vm9 }
 0x807   :  { %v831_v39 = vsub.f32 1.0, %v830_v34 }
 0x809   :  { %v832_v10 = vmul.f32 %v1259_v29, %v831_v39 }
 0x80b   :  { %v833_v48 = vadd.f32 %v1259_v29, %v832_v10 }
 0x80d   :  { %v837_v52 = vsel %vm836_vm11, %v1259_v29, %v833_v48 }
 0x80e   :  { %v842_v38 = vsel %vm839_vm12, %v841_v49, %v837_v52  ;;  %vm1150_vm12 = vcmask 64512  }
 0x80f   :  { %v845_v42 = vmul.f32 %v844_v32, %v842_v38  ;;  %v848_v57 = vsub.f32 1.0, %v842_v38  ;;  %v854_v61 = vmul.f32 %v842_v38, %v776_v55 }
 0x811   :  { %v846_v53 = vadd.f32 %v845_v42, %v778_v5 }
 0x813   :  { %1260 = vtanh.f32 %v846_v53 }
 0x819   :  { %v1261_v56 = vpop.eup %1260 }
 0x81a   :  { %850 = vrot.lane.b32.xlu2 %v1261_v56, %s1364_s7 }
 0x874   :  { %v851_v58 = vpop.permute.xlu2 %850 }
 0x875   :  { %v853_v62 = vmul.f32 %v851_v58, %v848_v57 }
 0x877   :  { %v855_v63 = vadd.f32 %v854_v61, %v853_v62 }
 0x879   :  { %859 = vrot.lane.b32.xlu0 %v855_v63, %s1364_s7 }
 0x8eb   :  { %v860_v0 = vpop.permute.xlu0 %859 }
 0x8ec   :  { %1211 = vmatmul.msk.f32.vlgmr.msrb.gmra.mxu3 %vm358_vm2, %v860_v0  ;;  %1212 = vmatmul.msk.f32.vlgmr.msrb.gmra.mxu1 %vm358_vm2, %v860_v0 }
 0x969   :  { %v900_v51 = vpop.f32.mrf.mxu1 }
 0x96a   :  { %v923_v26 = vadd.f32 %v1794_v40, %v900_v51 }
 0x96f   :  { %v880_v1 = vpop.f32.mrf.mxu3 }
 0x970   :  { %v903_v59 = vadd.f32 %v880_v1, %v856_v3 }
 0x972   :  { %v1213_v60 = vmul.f32 -1.442695, %v903_v59 }
 0x974   :  { %1262 = vpow2.f32 %v1213_v60 }
 0x97a   :  { %v1263_v5 = vpop.eup %1262 }
 0x97b   :  { %v907_v2 = vadd.f32 1.0, %v1263_v5 }
 0x97d   :  { %1264 = vrcp.f32 %v907_v2  ;;  %v919_v45 = vand.u32 2147483648, %v907_v2  ;;  %v917_v47 = vand.u32 2147483647, %v907_v2  ;;  %vm913_vm14 = vweird.f32 %v907_v2 }
 0x97f   :  { %v920_v7 = vor.u32 1.1754944e-38, %v919_v45  ;;  %vm918_vm1 = vcmp.eq.f32.partialorder %v917_v47, 8.507059e+37 }
 0x983   :  { %v1265_v4 = vpop.eup %1264 }
 0x984   :  { %v909_v41 = vmul.f32 %v1265_v4, %v907_v2  ;;  %vm914_vm13 = vweird.f32 %v1265_v4 }
 0x985   :  { %vm915_vm15 = vmor %vm913_vm14, %vm914_vm13 }
 0x986   :  { %v910_v23 = vsub.f32 1.0, %v909_v41 }
 0x988   :  { %v911_v36 = vmul.f32 %v1265_v4, %v910_v23 }
 0x98a   :  { %v912_v6 = vadd.f32 %v1265_v4, %v911_v36 }
 0x98c   :  { %v916_v50 = vsel %vm915_vm15, %v1265_v4, %v912_v6 }
 0x98d   :  { %v921_v3 = vsel %vm918_vm1, %v920_v7, %v916_v50  ;;  %v1100_v7 = vld [vmem:[%s1991_s9 + $0x38] sm:$0xff]  ;;  %v1093_v50 = vld [vmem:[%s1991_s9] sm:$0xff] }
 0x98e   :  { %v924_v9 = vmul.f32 %v923_v26, %v921_v3  ;;  %v927_v21 = vsub.f32 1.0, %v921_v3  ;;  %v933_v46 = vmul.f32 %v921_v3, %v855_v63  ;;  %1118 = vmatpush.msrb.mxu0 %v1100_v7  ;;  %v1094_v26 = vld [vmem:[%s1991_s9 + $0x8] sm:$0xff] }
 0x990   :  { %v925_v55 = vadd.f32 %v924_v9, %v857_v16 }
 0x992   :  { %1266 = vtanh.f32 %v925_v55 }
 0x998   :  { %v1267_v19 = vpop.eup %1266 }
 0x999   :  { %929 = vrot.lane.b32.xlu1 %v1267_v19, %s1364_s7 }
 0xa0b   :  { %v930_v17 = vpop.permute.xlu1 %929 }
 0xa0c   :  { %v932_v24 = vmul.f32 %v930_v17, %v927_v21 }
 0xa0e   :  { %v934_v14 = vadd.f32 %v933_v46, %v932_v24  ;;  %v1231_v46 = vld [vmem:[#allocation7] ss:$0 sm:$0xff] }
 0xa10   :  { %938 = vrot.lane.b32.xlu2 %v934_v14, %s1364_s7 }
 0xa6a   :  { %v939_v29 = vpop.permute.xlu2 %938 }
 0xa6b   :  { %1214 = vmatmul.msk.f32.vlgmr.msra.gmra.mxu0 %vm358_vm2, %v939_v29  ;;  %1215 = vmatmul.msk.f32.vlgmr.msrb.gmra.mxu2 %vm358_vm2, %v939_v29 }
 0xae8   :  { %v959_v34 = vpop.f32.mrf.mxu0 }
 0xae9   :  { %v982_v11 = vadd.f32 %v959_v34, %v935_v13 }
 0xaeb   :  { %v1216_v12 = vmul.f32 -1.442695, %v982_v11 }
 0xaed   :  { %1268 = vpow2.f32 %v1216_v12 }
 0xaee   :  { %v979_v52 = vpop.f32.mrf.mxu2 }
 0xaef   :  { %v1002_v22 = vadd.f32 %v1794_v40, %v979_v52 }
 0xaf3   :  { %v1269_v16 = vpop.eup %1268 }
 0xaf4   :  { %v986_v39 = vadd.f32 1.0, %v1269_v16 }
 0xaf6   :  { %1270 = vrcp.f32 %v986_v39  ;;  %v998_v44 = vand.u32 2147483648, %v986_v39  ;;  %v996_v49 = vand.u32 2147483647, %v986_v39  ;;  %vm992_vm6 = vweird.f32 %v986_v39 }
 0xaf8   :  { %v999_v38 = vor.u32 1.1754944e-38, %v998_v44  ;;  %vm997_vm8 = vcmp.eq.f32.partialorder %v996_v49, 8.507059e+37 }
 0xafc   :  { %v1271_v35 = vpop.eup %1270 }
 0xafd   :  { %v988_v10 = vmul.f32 %v1271_v35, %v986_v39  ;;  %vm993_vm5 = vweird.f32 %v1271_v35 }
 0xafe   :  { %vm994_vm7 = vmor %vm992_vm6, %vm993_vm5 }
 0xaff   :  { %v989_v43 = vsub.f32 1.0, %v988_v10 }
 0xb01   :  { %v990_v48 = vmul.f32 %v1271_v35, %v989_v43 }
 0xb03   :  { %v991_v32 = vadd.f32 %v1271_v35, %v990_v48 }
 0xb05   :  { %v995_v42 = vsel %vm994_vm7, %v1271_v35, %v991_v32 }
 0xb06   :  { %v1000_v8 = vsel %vm997_vm8, %v999_v38, %v995_v42 }
 0xb07   :  { %v1003_v13 = vmul.f32 %v1002_v22, %v1000_v8  ;;  %v1006_v57 = vsub.f32 1.0, %v1000_v8  ;;  %v1012_v61 = vmul.f32 %v1000_v8, %v934_v14 }
 0xb09   :  { %v1004_v53 = vadd.f32 %v1003_v13, %v936_v15 }
 0xb0b   :  { %1272 = vtanh.f32 %v1004_v53 }
 0xb11   :  { %v1273_v56 = vpop.eup %1272 }
 0xb12   :  { %1008 = vrot.lane.b32.xlu0 %v1273_v56, %s1364_s7 }
 0xb84   :  { %v1009_v58 = vpop.permute.xlu0 %1008 }
 0xb85   :  { %v1011_v62 = vmul.f32 %v1009_v58, %v1006_v57 }
 0xb87   :  { %v1013_v63 = vadd.f32 %v1012_v61, %v1011_v62 }
 0xb89   :  { %1017 = vrot.lane.b32.xlu1 %v1013_v63, %s1364_s7 }
 0xbfb   :  { %v1018_v0 = vpop.permute.xlu1 %1017 }
 0xbfc   :  { %1217 = vmatmul.msk.f32.vlgmr.msra.gmra.mxu3 %vm358_vm2, %v1018_v0  ;;  %1218 = vmatmul.msk.f32.vlgmr.msra.gmra.mxu1 %vm358_vm2, %v1018_v0 }
 0xc79   :  { %v1058_v45 = vpop.f32.mrf.mxu1 }
 0xc7a   :  { %v1081_v18 = vadd.f32 %v1794_v40, %v1058_v45  ;;  %v1099_v40 = vld [vmem:[%s1991_s9 + $0x30] sm:$0xff] }
 0xc7b   :  { %1119 = vmatpush.msrb.mxu0 %v1099_v40 }
 0xc7d   :  { %1120 = vmatpush.msrb.mxu0 %v1098_v54 }
 0xc7f   :  { %v1038_v1 = vpop.f32.mrf.mxu3  ;;  %1121 = vmatpush.msrb.mxu0 %v1097_v30 }
 0xc80   :  { %v1061_v25 = vadd.f32 %v1038_v1, %v1014_v28 }
 0xc81   :  { %1122 = vmatpush.msrb.mxu0 %v1096_v31 }
 0xc82   :  { %v1219_v27 = vmul.f32 -1.442695, %v1061_v25 }
 0xc84   :  { %1274 = vpow2.f32 %v1219_v27 }
 0xc8a   :  { %v1275_v15 = vpop.eup %1274 }
 0xc8b   :  { %v1065_v59 = vadd.f32 1.0, %v1275_v15 }
 0xc8d   :  { %1276 = vrcp.f32 %v1065_v59  ;;  %v1077_v4 = vand.u32 2147483648, %v1065_v59  ;;  %v1075_v23 = vand.u32 2147483647, %v1065_v59  ;;  %vm1071_vm10 = vweird.f32 %v1065_v59 }
 0xc8f   :  { %v1078_v37 = vor.u32 1.1754944e-38, %v1077_v4  ;;  %vm1076_vm3 = vcmp.eq.f32.partialorder %v1075_v23, 8.507059e+37 }
 0xc93   :  { %v1277_v60 = vpop.eup %1276 }
 0xc94   :  { %v1067_v5 = vmul.f32 %v1277_v60, %v1065_v59  ;;  %vm1072_vm9 = vweird.f32 %v1277_v60 }
 0xc95   :  { %vm1073_vm11 = vmor %vm1071_vm10, %vm1072_vm9 }
 0xc96   :  { %v1068_v2 = vsub.f32 1.0, %v1067_v5 }
 0xc98   :  { %v1069_v41 = vmul.f32 %v1277_v60, %v1068_v2 }
 0xc9a   :  { %v1070_v36 = vadd.f32 %v1277_v60, %v1069_v41 }
 0xc9c   :  { %v1074_v20 = vsel %vm1073_vm11, %v1277_v60, %v1070_v36 }
 0xc9d   :  { %v1079_v28 = vsel %vm1076_vm3, %v1078_v37, %v1074_v20 }
 0xc9e   :  { %v1082_v47 = vmul.f32 %v1081_v18, %v1079_v28  ;;  %v1085_v3 = vsub.f32 1.0, %v1079_v28  ;;  %v1091_v55 = vmul.f32 %v1079_v28, %v1013_v63 }
 0xca0   :  { %v1083_v51 = vadd.f32 %v1082_v47, %v1015_v33  ;;  %v1095_v33 = vld [vmem:[%s1991_s9 + $0x10] sm:$0xff] }
 0xca1   :  { %1123 = vmatpush.msrb.mxu0 %v1095_v33 }
 0xca2   :  { %1278 = vtanh.f32 %v1083_v51 }
 0xca3   :  { %1124 = vmatpush.msrb.mxu0 %v1094_v26 }
 0xca5   :  { %1125 = vmatpush.msrb.mxu0 %v1093_v50 }
 0xca8   :  { %v1279_v6 = vpop.eup %1278 }
 0xca9   :  { %1087 = vrot.lane.b32.xlu2 %v1279_v6, %s1364_s7 }
 0xd03   :  { %v1088_v9 = vpop.permute.xlu2 %1087 }
 0xd04   :  { %v1090_v19 = vmul.f32 %v1088_v9, %v1085_v3 }
 0xd06   :  { %v1092_v21 = vadd.f32 %v1091_v55, %v1090_v19 }
 0xd08   :  { %1106 = vrot.lane.b32.xlu0 %v1092_v21, %s1364_s7 }
 0xd7a   :  { %v1107_v17 = vpop.permute.xlu0 %1106 }
 0xd7b   :  { %1220 = vmatmul.msk.f32.vlgmr.msrb.gmra.mxu0 %vm358_vm2, %v1107_v17 }
 0xdf8   :  { %v1127_v24 = vpop.f32.mrf.mxu0 }
 0xdf9   :  { %v1128_v14 = vadd.f32 %v1231_v46, %v1127_v24 }
 0xdfb   :  { %v1133_v29 = vand.u32 2147483647, %v1128_v14  ;;  %v1130_v49 = vmax.f32 %v1128_v14, 0.0  ;;  %vm1131_vm2 = vcmp.ne.f32.partialorder %v1128_v14, %v1128_v14 }
 0xdfd   :  { %v1134_v34 = vsub.f32 0.0, %v1133_v29 }
 0xdff   :  { %v1135_v11 = vmul.f32 1.442695, %v1134_v34 }
 0xe01   :  { %1280 = vpow2.f32 %v1135_v11 }
 0xe07   :  { %v1281_v12 = vpop.eup %1280 }
 0xe08   :  { %v1137_v16 = vadd.f32 1.0, %v1281_v12  ;;  %v1140_v39 = vmul.f32 -0.5, %v1281_v12  ;;  %v1143_v10 = vand.u32 2147483647, %v1281_v12 }
 0xe0a   :  { %1282 = vlog2.f32 %v1137_v16  ;;  %v1141_v35 = vadd.f32 1.0, %v1140_v39  ;;  %vm1144_vm4 = vcmp.lt.f32.partialorder %v1143_v10, 0.0004427343 }
 0xe0c   :  { %v1142_v48 = vmul.f32 %v1281_v12, %v1141_v35 }
 0xe10   :  { %v1283_v43 = vpop.eup %1282 }
 0xe11   :  { %v1139_v44 = vmul.f32 0.6931472, %v1283_v43 }
 0xe13   :  { %v1145_v52 = vsel %vm1144_vm4, %v1142_v48, %v1139_v44 }
 0xe14   :  { %v1146_v32 = vadd.f32 %v1145_v52, %v1130_v49 }
 0xe16   :  { %v1147_v38 = vsel %vm1131_vm2, %v1128_v14, %v1146_v32 }
 0xe17   :  { %v1148_v42 = vmax.f32 %v1147_v38, 1e-05 }
 0xe19   :  { %v1149_v22 = vmin.f32 %v1148_v42, 5.0 }
 0xe1b   :  { %v1151_v8 = vsel %vm1150_vm12, %v1128_v14, %v1149_v22 }
 0xe1c   :  { %1152 = vst.msk [vmem:[%s1993_s11] sm:$0xff] %vm93_vm0, %v1151_v8 }
 0xe1d   :  { %1157 = vsyncpa [#allocation4], 1 }
 0xe1e   :  { %1158 = vsyncpa [#allocation6], 1 }

</bundles_post_ra>
